<compile_context>
chip_gen: v5e
topology: v5e:2x2
jax: 0.10.0
libtpu: 0.0.40
codegen_flags: <defaults>
</compile_context>

<pallas_src>
import jax
import jax.numpy as jnp
from jax.experimental import pallas as pl
from jax.experimental.pallas import tpu as pltpu

EPS = 1e-5


def _round_up(a, m):
    return (a + m - 1) // m * m


def mlp_forward(x, params, *, tb=None):
    """x: any shape with leading batch dim; flattened to (B, input_size) like ext.View."""
    w_in, b_in, w_hid, b_hid, w_out, b_out = params  # b_in/b_hid unused: cancelled by BN
    B = x.shape[0]
    x_flat = x.reshape(B, -1)
    if x_flat.dtype != jnp.bfloat16:
        x_flat = x_flat.astype(jnp.float32)          # no-op for f32 inputs
    K = x_flat.shape[1]
    width = w_in.shape[1]
    out_dim = w_out.shape[1]
    n_hidden = w_hid.shape[0]

    # Lane-aligned (multiple-of-128) padded feature dims (weights only; x stays unpadded).
    W_pad = _round_up(width, 128)
    O_pad = _round_up(out_dim, 128)

    # Batch tiling: large tiles to amortize the ~0.35us per-grid-step overhead.
    if tb is None:
        tb = min(_round_up(B, 128 if B >= 128 else 16), 1024)
    tb = _round_up(max(int(tb), 16), 16)
    n_tiles = pl.cdiv(B, tb)
    B_pad = n_tiles * tb          # VMEM-resident row count only; x is NOT padded in HBM.
    n_pad = B_pad - B

    # Pad + cast the (tiny) weights in the wrapper.  Zero padding is semantically inert:
    # padded weight rows/cols only ever produce zeros (no input/hidden bias), and padded-
    # feature BN stats are 0-mean/0-var which normalize back to exactly zero.
    w1 = jnp.pad(w_in, ((0, 0), (0, W_pad - width))).astype(jnp.bfloat16)
    wh = jnp.pad(w_hid, ((0, 0), (0, W_pad - width), (0, W_pad - width))).astype(jnp.bfloat16)
    wo = jnp.pad(w_out, ((0, W_pad - width), (0, O_pad - out_dim))).astype(jnp.bfloat16)
    bo = jnp.pad(b_out.astype(jnp.float32), ((0, 0), (0, O_pad - out_dim)))

    inv_b = 1.0 / float(B)        # BN divisor is the TRUE batch size

    def kernel(x_ref, w1_ref, wh_ref, wo_ref, bo_ref, o_ref, h_scr, s_scr, q_scr):
        i = pl.program_id(0)
        nt = pl.num_programs(0)

        @pl.when(i == 0)
        def _init():
            s_scr[...] = jnp.zeros_like(s_scr)
            q_scr[...] = jnp.zeros_like(q_scr)

        # --- streaming pass: layer-1 matmul for this batch tile (bf16 MXU, f32 acc) ---
        # x is streamed as f32 and cast to bf16 here (VALU work hidden under the DMA).
        h1 = jnp.dot(x_ref[...].astype(jnp.bfloat16), w1_ref[...],
                     preferred_element_type=jnp.float32)
        if n_pad:
            # The last tile reads past the end of x (undefined data); select those rows
            # to exactly 0 so they never pollute BN stats (jnp.where also kills NaNs).
            rows = jax.lax.broadcasted_iota(jnp.int32, (tb, 1), 0) + i * tb
            h1 = jnp.where(rows < B, h1, 0.0)
        row0 = pl.multiple_of(i * tb, tb)
        h_scr[pl.ds(row0, tb), :] = h1.astype(h_scr.dtype)       # bf16 resident storage
        s_scr[...] += jnp.sum(h1, axis=0, keepdims=True)
        q_scr[...] += jnp.sum(h1 * h1, axis=0, keepdims=True)

        # --- finalize on the last tile: full batch (B_pad, 128) is now VMEM-resident ---
        @pl.when(i == nt - 1)
        def _finalize():
            def bn_stats(s, q):
                mean = s * inv_b
                var = jnp.maximum(q * inv_b - mean * mean, 0.0)   # biased variance
                return mean, jax.lax.rsqrt(var + EPS)

            # Layer 1: normalize with exact full-batch stats.  Padded rows of `a` equal the
            # constant (1,128) vector v (their h is exactly 0); track it analytically instead
            # of multiplying every layer by a full (B_pad, 128) row mask.
            mean, rstd = bn_stats(s_scr[...], q_scr[...])
            a = jnp.maximum((h_scr[...].astype(jnp.float32) - mean) * rstd, 0.0)
            v = jnp.maximum(-mean * rstd, 0.0)

            for l in range(n_hidden):                 # static unroll, small fixed depth
                a_bf = a.astype(jnp.bfloat16)
                h = jnp.dot(a_bf, wh_ref[l], preferred_element_type=jnp.float32)
                s = jnp.sum(h, axis=0, keepdims=True)
                q = jnp.sum(h * h, axis=0, keepdims=True)
                if n_pad:
                    # Padded rows of h are exactly u = v @ W (same bf16 operands, same MXU
                    # accumulation); remove their contribution from the stats as (1,128) ops.
                    u = jnp.dot(v.astype(jnp.bfloat16), wh_ref[l],
                                preferred_element_type=jnp.float32)
                    s = s - n_pad * u
                    q = q - n_pad * (u * u)
                else:
                    u = jnp.zeros_like(v)
                mean, rstd = bn_stats(s, q)
                a = jnp.maximum((h - mean) * rstd, 0.0)
                v = jnp.maximum((u - mean) * rstd, 0.0)

            # Output layer: Linear(width -> out), bias kept, no norm/activation.
            # Lane-dense 128-wide bf16 store; real rows/cols are sliced out in the wrapper.
            o_ref[...] = (
                jnp.dot(a.astype(jnp.bfloat16), wo_ref[...],
                        preferred_element_type=jnp.float32) + bo_ref[...]
            ).astype(o_ref.dtype)

    # VMEM budget from the actual buffers, clamped by this chip's physical capacity.
    vmem_needed = int(
        2 * tb * K * x_flat.dtype.itemsize            # streamed x tile, double-buffered
        + B_pad * W_pad * 2                           # h_scr (bf16, full batch)
        + 2 * B_pad * O_pad * 2                       # output block (bf16)
        + 4 * B_pad * W_pad * 4                       # finalize live f32 temps
        + 2 * 2 * (K * W_pad + n_hidden * W_pad * W_pad + W_pad * O_pad + O_pad)  # weights
        + (2 << 20)                                   # headroom
    )
    try:
        info = pltpu.get_tpu_info()
        vmem_cap = int(getattr(info, "vmem_capacity_bytes", 0)) or (64 << 20)
    except Exception:
        vmem_cap = 64 << 20                           # conservative fallback (v7x per-core)
    vmem_limit = min(max(vmem_needed, 32 << 20), max(vmem_cap - (8 << 20), 16 << 20))

    out = pl.pallas_call(
        kernel,
        out_shape=jax.ShapeDtypeStruct((B_pad, O_pad), jnp.bfloat16),
        grid=(n_tiles,),
        in_specs=[
            pl.BlockSpec((tb, K), lambda i: (i, 0)),                   # x: streamed, unpadded
            pl.BlockSpec((K, W_pad), lambda i: (0, 0)),                # w1: resident
            pl.BlockSpec((n_hidden, W_pad, W_pad), lambda i: (0, 0, 0)),  # hidden weights
            pl.BlockSpec((W_pad, O_pad), lambda i: (0, 0)),            # w_out
            pl.BlockSpec((1, O_pad), lambda i: (0, 0)),                # b_out
        ],
        out_specs=pl.BlockSpec((B_pad, O_pad), lambda i: (0, 0)),      # resident, stored at end
        scratch_shapes=[
            pltpu.VMEM((B_pad, W_pad), jnp.bfloat16),  # layer-1 pre-activations (full batch)
            pltpu.VMEM((1, W_pad), jnp.float32),       # BN sum
            pltpu.VMEM((1, W_pad), jnp.float32),       # BN sum of squares
        ],
        compiler_params=pltpu.CompilerParams(
            # BN stats + finalize carry state across batch tiles -> reduction-style axis.
            dimension_semantics=("arbitrary",),
            vmem_limit_bytes=vmem_limit,
        ),
    )(x_flat, w1, wh, wo, bo)

    return out[:B, :out_dim].astype(jnp.float32)


def init_params(key, depth=4, width=100, input_size=28 * 28, output_size=10):
    """PyTorch-style init: U(-1/sqrt(fan_in), 1/sqrt(fan_in)) for all Linear layers."""
    def linear(key, fan_in, fan_out):
        kw, kb = jax.random.split(key)
        bound = 1.0 / jnp.sqrt(fan_in)
        w = jax.random.uniform(kw, (fan_in, fan_out), jnp.float32, -bound, bound)
        b = jax.random.uniform(kb, (1, fan_out), jnp.float32, -bound, bound)
        return w, b

    keys = jax.random.split(key, depth + 1)
    w_in, b_in = linear(keys[0], input_size, width)
    hid_ws, hid_bs = [], []
    for i in range(depth - 1):
        w, b = linear(keys[1 + i], width, width)
        hid_ws.append(w)
        hid_bs.append(b)
    w_hid = jnp.stack(hid_ws, axis=0)   # (depth-1, width, width)
    b_hid = jnp.stack(hid_bs, axis=0)   # (depth-1, 1, width)
    w_out, b_out = linear(keys[depth], width, output_size)
    return (w_in, b_in, w_hid, b_hid, w_out, b_out)


def reference_forward(x, params):
    """Pure-JAX reference with full biases (demonstrates the BN bias cancellation)."""
    w_in, b_in, w_hid, b_hid, w_out, b_out = params
    h = x.reshape(x.shape[0], -1).astype(jnp.float32)

    def layer(h, w, b):
        h = jnp.dot(h.astype(jnp.bfloat16), w.astype(jnp.bfloat16),
                    preferred_element_type=jnp.float32) + b
        mean = jnp.mean(h, axis=0, keepdims=True)
        var = jnp.maximum(jnp.mean(h * h, axis=0, keepdims=True) - mean * mean, 0.0)
        return jnp.maximum((h - mean) * jax.lax.rsqrt(var + EPS), 0.0)

    h = layer(h, w_in, b_in)
    for i in range(w_hid.shape[0]):
        h = layer(h, w_hid[i], b_hid[i])
    return jnp.dot(h.astype(jnp.bfloat16), w_out.astype(jnp.bfloat16),
                   preferred_element_type=jnp.float32) + b_out


if __name__ == "__main__":
    key = jax.random.PRNGKey(0)
    k_params, k_x = jax.random.split(key)

    depth, width, input_size, output_size = 4, 100, 28 * 28, 10
    batch = 40  # with tb=16: 3 batch tiles, a ragged last tile (OOB-row mask) and the
                # analytic padded-row stats correction are all exercised

    params = init_params(k_params, depth, width, input_size, output_size)
    # MNIST-like NCHW input; ext.View flattens it to (B, 784).
    x = jax.random.normal(k_x, (batch, 1, 28, 28), jnp.float32)

    out = mlp_forward(x, params, tb=16)
    out = jax.block_until_ready(out)
    assert out.shape == (batch, output_size), out.shape

    ref = jax.block_until_ready(reference_forward(x, params))
    err = float(jnp.max(jnp.abs(out - ref)))
    assert err < 5e-2, f"mismatch vs reference: max|err|={err}"

    print("KERNEL_OK")
</pallas_src>

<mosaic_0001>
module attributes {stable_mosaic.version = 11 : i64} {
  func.func @kernel(%arg0: i32, %arg1: memref<16x784xf32, #tpu.memory_space<vmem>>, %arg2: memref<784x128xbf16, #tpu.memory_space<vmem>>, %arg3: memref<3x128x128xbf16, #tpu.memory_space<vmem>>, %arg4: memref<128x128xbf16, #tpu.memory_space<vmem>>, %arg5: memref<1x128xf32, #tpu.memory_space<vmem>>, %arg6: memref<48x128xbf16, #tpu.memory_space<vmem>>, %arg7: memref<48x128xbf16, #tpu.memory_space<vmem>>, %arg8: memref<1x128xf32, #tpu.memory_space<vmem>>, %arg9: memref<1x128xf32, #tpu.memory_space<vmem>>) attributes {dimension_semantics = [#tpu.dimension_semantics<arbitrary>], iteration_bounds = array<i64: 3>, scalar_prefetch = 0 : i64, scratch_operands = 3 : i64, tpu.core_type = #tpu.core_type<tc>, window_params = [{transform_indices = @transform_0, window_bounds = array<i64: 16, 784>}, {pipeline_mode = #tpu.pipeline_mode<synchronous>, transform_indices = @transform_1, window_bounds = array<i64: 784, 128>}, {pipeline_mode = #tpu.pipeline_mode<synchronous>, transform_indices = @transform_2, window_bounds = array<i64: 3, 128, 128>}, {pipeline_mode = #tpu.pipeline_mode<synchronous>, transform_indices = @transform_3, window_bounds = array<i64: 128, 128>}, {pipeline_mode = #tpu.pipeline_mode<synchronous>, transform_indices = @transform_4, window_bounds = array<i64: 1, 128>}, {pipeline_mode = #tpu.pipeline_mode<synchronous>, transform_indices = @transform_5, window_bounds = array<i64: 48, 128>}]} {
    %c0_i32 = arith.constant 0 : i32
    %0 = arith.cmpi eq, %arg0, %c0_i32 : i32
    %1 = arith.extui %0 : i1 to i32
    %c0_i32_0 = arith.constant 0 : i32
    %2 = arith.cmpi ne, %1, %c0_i32_0 : i32
    scf.if %2 {
      %cst_18 = arith.constant 0.000000e+00 : f32
      %36 = vector.broadcast %cst_18 : f32 to vector<1x128xf32>
      %c0_19 = arith.constant 0 : index
      %c0_20 = arith.constant 0 : index
      %37 = vector.load %arg8[%c0_19, %c0_20] : memref<1x128xf32, #tpu.memory_space<vmem>>, vector<1x128xf32>
      tpu.vector_store %arg8[%c0_19, %c0_20], %36 {strides = array<i32>} : memref<1x128xf32, #tpu.memory_space<vmem>>, vector<1x128xf32>,
      %cst_21 = arith.constant 0.000000e+00 : f32
      %38 = vector.broadcast %cst_21 : f32 to vector<1x128xf32>
      %c0_22 = arith.constant 0 : index
      %c0_23 = arith.constant 0 : index
      %39 = vector.load %arg9[%c0_22, %c0_23] : memref<1x128xf32, #tpu.memory_space<vmem>>, vector<1x128xf32>
      tpu.vector_store %arg9[%c0_22, %c0_23], %38 {strides = array<i32>} : memref<1x128xf32, #tpu.memory_space<vmem>>, vector<1x128xf32>,
    } else {
    }
    %c0 = arith.constant 0 : index
    %c0_1 = arith.constant 0 : index
    %3 = vector.load %arg1[%c0, %c0_1] : memref<16x784xf32, #tpu.memory_space<vmem>>, vector<16x784xf32>
    %4 = arith.truncf %3 : vector<16x784xf32> to vector<16x784xbf16>
    %c0_2 = arith.constant 0 : index
    %c0_3 = arith.constant 0 : index
    %5 = vector.load %arg2[%c0_2, %c0_3] : memref<784x128xbf16, #tpu.memory_space<vmem>>, vector<784x128xbf16>
    %cst = arith.constant dense<0.000000e+00> : vector<16x128xf32>
    %6 = tpu.matmul %4, %5, %cst {dimension_numbers = #tpu.dot_dimension_numbers<[1], [0], [0], [1], [0, 0, 1, 1], [], []>} : vector<16x784xbf16>, vector<784x128xbf16>, vector<16x128xf32> -> vector<16x128xf32>
    %7 = tpu.iota {dimensions = array<i32: 0>} : vector<16x1xi32>
    %c16_i32 = arith.constant 16 : i32
    %8 = arith.muli %arg0, %c16_i32 : i32
    %9 = vector.broadcast %8 : i32 to vector<16x1xi32>
    %10 = arith.addi %7, %9 : vector<16x1xi32>
    %c40_i32 = arith.constant 40 : i32
    %11 = vector.broadcast %c40_i32 : i32 to vector<16x1xi32>
    %12 = arith.cmpi slt, %10, %11 : vector<16x1xi32>
    %cst_4 = arith.constant 0.000000e+00 : f32
    %13 = vector.shape_cast %12 : vector<16x1xi1> to vector<16x1xi1>
    %14 = vector.broadcast %13 : vector<16x1xi1> to vector<16x128xi1>
    %15 = vector.broadcast %cst_4 : f32 to vector<16x128xf32>
    %16 = arith.select %14, %6, %15 : vector<16x128xi1>, vector<16x128xf32>
    %c16_i32_5 = arith.constant 16 : i32
    %17 = arith.muli %arg0, %c16_i32_5 : i32
    %18 = tpu.assume_multiple %17, 16 : i32
    %19 = arith.truncf %16 : vector<16x128xf32> to vector<16x128xbf16>
    %20 = arith.index_cast %18 : i32 to index
    %c0_6 = arith.constant 0 : index
    %21 = vector.load %arg7[%20, %c0_6] : memref<48x128xbf16, #tpu.memory_space<vmem>>, vector<16x128xbf16>
    tpu.vector_store %arg7[%20, %c0_6], %19 {strides = array<i32>} : memref<48x128xbf16, #tpu.memory_space<vmem>>, vector<16x128xbf16>,
    %c0_7 = arith.constant 0 : index
    %c0_8 = arith.constant 0 : index
    %22 = vector.load %arg8[%c0_7, %c0_8] : memref<1x128xf32, #tpu.memory_space<vmem>>, vector<1x128xf32>
    %cst_9 = arith.constant dense<0.000000e+00> : vector<128xf32>
    %23 = vector.multi_reduction <add>, %16, %cst_9 [0] : vector<16x128xf32> to vector<128xf32>
    %24 = vector.shape_cast %23 : vector<128xf32> to vector<1x128xf32>
    %25 = arith.addf %22, %24 : vector<1x128xf32>
    %c0_10 = arith.constant 0 : index
    %c0_11 = arith.constant 0 : index
    %26 = vector.load %arg8[%c0_10, %c0_11] : memref<1x128xf32, #tpu.memory_space<vmem>>, vector<1x128xf32>
    tpu.vector_store %arg8[%c0_10, %c0_11], %25 {strides = array<i32>} : memref<1x128xf32, #tpu.memory_space<vmem>>, vector<1x128xf32>,
    %c0_12 = arith.constant 0 : index
    %c0_13 = arith.constant 0 : index
    %27 = vector.load %arg9[%c0_12, %c0_13] : memref<1x128xf32, #tpu.memory_space<vmem>>, vector<1x128xf32>
    %28 = arith.mulf %16, %16 : vector<16x128xf32>
    %cst_14 = arith.constant dense<0.000000e+00> : vector<128xf32>
    %29 = vector.multi_reduction <add>, %28, %cst_14 [0] : vector<16x128xf32> to vector<128xf32>
    %30 = vector.shape_cast %29 : vector<128xf32> to vector<1x128xf32>
    %31 = arith.addf %27, %30 : vector<1x128xf32>
    %c0_15 = arith.constant 0 : index
    %c0_16 = arith.constant 0 : index
    %32 = vector.load %arg9[%c0_15, %c0_16] : memref<1x128xf32, #tpu.memory_space<vmem>>, vector<1x128xf32>
    tpu.vector_store %arg9[%c0_15, %c0_16], %31 {strides = array<i32>} : memref<1x128xf32, #tpu.memory_space<vmem>>, vector<1x128xf32>,
    %c2_i32 = arith.constant 2 : i32
    %33 = arith.cmpi eq, %arg0, %c2_i32 : i32
    %34 = arith.extui %33 : i1 to i32
    %c0_i32_17 = arith.constant 0 : i32
    %35 = arith.cmpi ne, %34, %c0_i32_17 : i32
    scf.if %35 {
      %c0_18 = arith.constant 0 : index
      %c0_19 = arith.constant 0 : index
      %36 = vector.load %arg8[%c0_18, %c0_19] : memref<1x128xf32, #tpu.memory_space<vmem>>, vector<1x128xf32>
      %c0_20 = arith.constant 0 : index
      %c0_21 = arith.constant 0 : index
      %37 = vector.load %arg9[%c0_20, %c0_21] : memref<1x128xf32, #tpu.memory_space<vmem>>, vector<1x128xf32>
      %cst_22 = arith.constant 2.500000e-02 : f32
      %38 = vector.broadcast %cst_22 : f32 to vector<1x128xf32>
      %39 = arith.mulf %36, %38 : vector<1x128xf32>
      %cst_23 = arith.constant 2.500000e-02 : f32
      %40 = vector.broadcast %cst_23 : f32 to vector<1x128xf32>
      %41 = arith.mulf %37, %40 : vector<1x128xf32>
      %42 = arith.mulf %39, %39 : vector<1x128xf32>
      %43 = arith.subf %41, %42 : vector<1x128xf32>
      %cst_24 = arith.constant 0.000000e+00 : f32
      %44 = vector.broadcast %cst_24 : f32 to vector<1x128xf32>
      %45 = arith.maximumf %43, %44 : vector<1x128xf32>
      %cst_25 = arith.constant 9.99999974E-6 : f32
      %46 = vector.broadcast %cst_25 : f32 to vector<1x128xf32>
      %47 = arith.addf %45, %46 : vector<1x128xf32>
      %48 = math.rsqrt %47 : vector<1x128xf32>
      %c0_26 = arith.constant 0 : index
      %c0_27 = arith.constant 0 : index
      %49 = vector.load %arg7[%c0_26, %c0_27] : memref<48x128xbf16, #tpu.memory_space<vmem>>, vector<48x128xbf16>
      %50 = arith.extf %49 : vector<48x128xbf16> to vector<48x128xf32>
      %51 = vector.broadcast %39 : vector<1x128xf32> to vector<48x128xf32>
      %52 = arith.subf %50, %51 : vector<48x128xf32>
      %53 = vector.broadcast %48 : vector<1x128xf32> to vector<48x128xf32>
      %54 = arith.mulf %52, %53 : vector<48x128xf32>
      %cst_28 = arith.constant 0.000000e+00 : f32
      %55 = vector.broadcast %cst_28 : f32 to vector<48x128xf32>
      %56 = arith.maximumf %54, %55 : vector<48x128xf32>
      %cst_29 = arith.constant 0.000000e+00 : f32
      %57 = vector.broadcast %cst_29 : f32 to vector<1x128xf32>
      %58 = arith.subf %57, %39 : vector<1x128xf32>
      %59 = arith.mulf %58, %48 : vector<1x128xf32>
      %cst_30 = arith.constant 0.000000e+00 : f32
      %60 = vector.broadcast %cst_30 : f32 to vector<1x128xf32>
      %61 = arith.maximumf %59, %60 : vector<1x128xf32>
      %62 = arith.truncf %56 : vector<48x128xf32> to vector<48x128xbf16>
      %c0_31 = arith.constant 0 : index
      %c0_32 = arith.constant 0 : index
      %c0_33 = arith.constant 0 : index
      %63 = vector.load %arg3[%c0_31, %c0_32, %c0_33] : memref<3x128x128xbf16, #tpu.memory_space<vmem>>, vector<1x128x128xbf16>
      %64 = vector.shape_cast %63 : vector<1x128x128xbf16> to vector<128x128xbf16>
      %cst_34 = arith.constant dense<0.000000e+00> : vector<48x128xf32>
      %65 = tpu.matmul %62, %64, %cst_34 {dimension_numbers = #tpu.dot_dimension_numbers<[1], [0], [0], [1], [0, 0, 1, 1], [], []>} : vector<48x128xbf16>, vector<128x128xbf16>, vector<48x128xf32> -> vector<48x128xf32>
      %cst_35 = arith.constant dense<0.000000e+00> : vector<128xf32>
      %66 = vector.multi_reduction <add>, %65, %cst_35 [0] : vector<48x128xf32> to vector<128xf32>
      %67 = vector.shape_cast %66 : vector<128xf32> to vector<1x128xf32>
      %68 = arith.mulf %65, %65 : vector<48x128xf32>
      %cst_36 = arith.constant dense<0.000000e+00> : vector<128xf32>
      %69 = vector.multi_reduction <add>, %68, %cst_36 [0] : vector<48x128xf32> to vector<128xf32>
      %70 = vector.shape_cast %69 : vector<128xf32> to vector<1x128xf32>
      %71 = arith.truncf %61 : vector<1x128xf32> to vector<1x128xbf16>
      %c0_37 = arith.constant 0 : index
      %c0_38 = arith.constant 0 : index
      %c0_39 = arith.constant 0 : index
      %72 = vector.load %arg3[%c0_37, %c0_38, %c0_39] : memref<3x128x128xbf16, #tpu.memory_space<vmem>>, vector<1x128x128xbf16>
      %73 = vector.shape_cast %72 : vector<1x128x128xbf16> to vector<128x128xbf16>
      %cst_40 = arith.constant dense<0.000000e+00> : vector<1x128xf32>
      %74 = tpu.matmul %71, %73, %cst_40 {dimension_numbers = #tpu.dot_dimension_numbers<[1], [0], [0], [1], [0, 0, 1, 1], [], []>} : vector<1x128xbf16>, vector<128x128xbf16>, vector<1x128xf32> -> vector<1x128xf32>
      %cst_41 = arith.constant 8.000000e+00 : f32
      %75 = vector.broadcast %cst_41 : f32 to vector<1x128xf32>
      %76 = arith.mulf %75, %74 : vector<1x128xf32>
      %77 = arith.subf %67, %76 : vector<1x128xf32>
      %78 = arith.mulf %74, %74 : vector<1x128xf32>
      %cst_42 = arith.constant 8.000000e+00 : f32
      %79 = vector.broadcast %cst_42 : f32 to vector<1x128xf32>
      %80 = arith.mulf %79, %78 : vector<1x128xf32>
      %81 = arith.subf %70, %80 : vector<1x128xf32>
      %cst_43 = arith.constant 2.500000e-02 : f32
      %82 = vector.broadcast %cst_43 : f32 to vector<1x128xf32>
      %83 = arith.mulf %77, %82 : vector<1x128xf32>
      %cst_44 = arith.constant 2.500000e-02 : f32
      %84 = vector.broadcast %cst_44 : f32 to vector<1x128xf32>
      %85 = arith.mulf %81, %84 : vector<1x128xf32>
      %86 = arith.mulf %83, %83 : vector<1x128xf32>
      %87 = arith.subf %85, %86 : vector<1x128xf32>
      %cst_45 = arith.constant 0.000000e+00 : f32
      %88 = vector.broadcast %cst_45 : f32 to vector<1x128xf32>
      %89 = arith.maximumf %87, %88 : vector<1x128xf32>
      %cst_46 = arith.constant 9.99999974E-6 : f32
      %90 = vector.broadcast %cst_46 : f32 to vector<1x128xf32>
      %91 = arith.addf %89, %90 : vector<1x128xf32>
      %92 = math.rsqrt %91 : vector<1x128xf32>
      %93 = vector.broadcast %83 : vector<1x128xf32> to vector<48x128xf32>
      %94 = arith.subf %65, %93 : vector<48x128xf32>
      %95 = vector.broadcast %92 : vector<1x128xf32> to vector<48x128xf32>
      %96 = arith.mulf %94, %95 : vector<48x128xf32>
      %cst_47 = arith.constant 0.000000e+00 : f32
      %97 = vector.broadcast %cst_47 : f32 to vector<48x128xf32>
      %98 = arith.maximumf %96, %97 : vector<48x128xf32>
      %99 = arith.subf %74, %83 : vector<1x128xf32>
      %100 = arith.mulf %99, %92 : vector<1x128xf32>
      %cst_48 = arith.constant 0.000000e+00 : f32
      %101 = vector.broadcast %cst_48 : f32 to vector<1x128xf32>
      %102 = arith.maximumf %100, %101 : vector<1x128xf32>
      %103 = arith.truncf %98 : vector<48x128xf32> to vector<48x128xbf16>
      %c1 = arith.constant 1 : index
      %c0_49 = arith.constant 0 : index
      %c0_50 = arith.constant 0 : index
      %104 = vector.load %arg3[%c1, %c0_49, %c0_50] : memref<3x128x128xbf16, #tpu.memory_space<vmem>>, vector<1x128x128xbf16>
      %105 = vector.shape_cast %104 : vector<1x128x128xbf16> to vector<128x128xbf16>
      %cst_51 = arith.constant dense<0.000000e+00> : vector<48x128xf32>
      %106 = tpu.matmul %103, %105, %cst_51 {dimension_numbers = #tpu.dot_dimension_numbers<[1], [0], [0], [1], [0, 0, 1, 1], [], []>} : vector<48x128xbf16>, vector<128x128xbf16>, vector<48x128xf32> -> vector<48x128xf32>
      %cst_52 = arith.constant dense<0.000000e+00> : vector<128xf32>
      %107 = vector.multi_reduction <add>, %106, %cst_52 [0] : vector<48x128xf32> to vector<128xf32>
      %108 = vector.shape_cast %107 : vector<128xf32> to vector<1x128xf32>
      %109 = arith.mulf %106, %106 : vector<48x128xf32>
      %cst_53 = arith.constant dense<0.000000e+00> : vector<128xf32>
      %110 = vector.multi_reduction <add>, %109, %cst_53 [0] : vector<48x128xf32> to vector<128xf32>
      %111 = vector.shape_cast %110 : vector<128xf32> to vector<1x128xf32>
      %112 = arith.truncf %102 : vector<1x128xf32> to vector<1x128xbf16>
      %c1_54 = arith.constant 1 : index
      %c0_55 = arith.constant 0 : index
      %c0_56 = arith.constant 0 : index
      %113 = vector.load %arg3[%c1_54, %c0_55, %c0_56] : memref<3x128x128xbf16, #tpu.memory_space<vmem>>, vector<1x128x128xbf16>
      %114 = vector.shape_cast %113 : vector<1x128x128xbf16> to vector<128x128xbf16>
      %cst_57 = arith.constant dense<0.000000e+00> : vector<1x128xf32>
      %115 = tpu.matmul %112, %114, %cst_57 {dimension_numbers = #tpu.dot_dimension_numbers<[1], [0], [0], [1], [0, 0, 1, 1], [], []>} : vector<1x128xbf16>, vector<128x128xbf16>, vector<1x128xf32> -> vector<1x128xf32>
      %cst_58 = arith.constant 8.000000e+00 : f32
      %116 = vector.broadcast %cst_58 : f32 to vector<1x128xf32>
      %117 = arith.mulf %116, %115 : vector<1x128xf32>
      %118 = arith.subf %108, %117 : vector<1x128xf32>
      %119 = arith.mulf %115, %115 : vector<1x128xf32>
      %cst_59 = arith.constant 8.000000e+00 : f32
      %120 = vector.broadcast %cst_59 : f32 to vector<1x128xf32>
      %121 = arith.mulf %120, %119 : vector<1x128xf32>
      %122 = arith.subf %111, %121 : vector<1x128xf32>
      %cst_60 = arith.constant 2.500000e-02 : f32
      %123 = vector.broadcast %cst_60 : f32 to vector<1x128xf32>
      %124 = arith.mulf %118, %123 : vector<1x128xf32>
      %cst_61 = arith.constant 2.500000e-02 : f32
      %125 = vector.broadcast %cst_61 : f32 to vector<1x128xf32>
      %126 = arith.mulf %122, %125 : vector<1x128xf32>
      %127 = arith.mulf %124, %124 : vector<1x128xf32>
      %128 = arith.subf %126, %127 : vector<1x128xf32>
      %cst_62 = arith.constant 0.000000e+00 : f32
      %129 = vector.broadcast %cst_62 : f32 to vector<1x128xf32>
      %130 = arith.maximumf %128, %129 : vector<1x128xf32>
      %cst_63 = arith.constant 9.99999974E-6 : f32
      %131 = vector.broadcast %cst_63 : f32 to vector<1x128xf32>
      %132 = arith.addf %130, %131 : vector<1x128xf32>
      %133 = math.rsqrt %132 : vector<1x128xf32>
      %134 = vector.broadcast %124 : vector<1x128xf32> to vector<48x128xf32>
      %135 = arith.subf %106, %134 : vector<48x128xf32>
      %136 = vector.broadcast %133 : vector<1x128xf32> to vector<48x128xf32>
      %137 = arith.mulf %135, %136 : vector<48x128xf32>
      %cst_64 = arith.constant 0.000000e+00 : f32
      %138 = vector.broadcast %cst_64 : f32 to vector<48x128xf32>
      %139 = arith.maximumf %137, %138 : vector<48x128xf32>
      %140 = arith.subf %115, %124 : vector<1x128xf32>
      %141 = arith.mulf %140, %133 : vector<1x128xf32>
      %cst_65 = arith.constant 0.000000e+00 : f32
      %142 = vector.broadcast %cst_65 : f32 to vector<1x128xf32>
      %143 = arith.maximumf %141, %142 : vector<1x128xf32>
      %144 = arith.truncf %139 : vector<48x128xf32> to vector<48x128xbf16>
      %c2 = arith.constant 2 : index
      %c0_66 = arith.constant 0 : index
      %c0_67 = arith.constant 0 : index
      %145 = vector.load %arg3[%c2, %c0_66, %c0_67] : memref<3x128x128xbf16, #tpu.memory_space<vmem>>, vector<1x128x128xbf16>
      %146 = vector.shape_cast %145 : vector<1x128x128xbf16> to vector<128x128xbf16>
      %cst_68 = arith.constant dense<0.000000e+00> : vector<48x128xf32>
      %147 = tpu.matmul %144, %146, %cst_68 {dimension_numbers = #tpu.dot_dimension_numbers<[1], [0], [0], [1], [0, 0, 1, 1], [], []>} : vector<48x128xbf16>, vector<128x128xbf16>, vector<48x128xf32> -> vector<48x128xf32>
      %cst_69 = arith.constant dense<0.000000e+00> : vector<128xf32>
      %148 = vector.multi_reduction <add>, %147, %cst_69 [0] : vector<48x128xf32> to vector<128xf32>
      %149 = vector.shape_cast %148 : vector<128xf32> to vector<1x128xf32>
      %150 = arith.mulf %147, %147 : vector<48x128xf32>
      %cst_70 = arith.constant dense<0.000000e+00> : vector<128xf32>
      %151 = vector.multi_reduction <add>, %150, %cst_70 [0] : vector<48x128xf32> to vector<128xf32>
      %152 = vector.shape_cast %151 : vector<128xf32> to vector<1x128xf32>
      %153 = arith.truncf %143 : vector<1x128xf32> to vector<1x128xbf16>
      %c2_71 = arith.constant 2 : index
      %c0_72 = arith.constant 0 : index
      %c0_73 = arith.constant 0 : index
      %154 = vector.load %arg3[%c2_71, %c0_72, %c0_73] : memref<3x128x128xbf16, #tpu.memory_space<vmem>>, vector<1x128x128xbf16>
      %155 = vector.shape_cast %154 : vector<1x128x128xbf16> to vector<128x128xbf16>
      %cst_74 = arith.constant dense<0.000000e+00> : vector<1x128xf32>
      %156 = tpu.matmul %153, %155, %cst_74 {dimension_numbers = #tpu.dot_dimension_numbers<[1], [0], [0], [1], [0, 0, 1, 1], [], []>} : vector<1x128xbf16>, vector<128x128xbf16>, vector<1x128xf32> -> vector<1x128xf32>
      %cst_75 = arith.constant 8.000000e+00 : f32
      %157 = vector.broadcast %cst_75 : f32 to vector<1x128xf32>
      %158 = arith.mulf %157, %156 : vector<1x128xf32>
      %159 = arith.subf %149, %158 : vector<1x128xf32>
      %160 = arith.mulf %156, %156 : vector<1x128xf32>
      %cst_76 = arith.constant 8.000000e+00 : f32
      %161 = vector.broadcast %cst_76 : f32 to vector<1x128xf32>
      %162 = arith.mulf %161, %160 : vector<1x128xf32>
      %163 = arith.subf %152, %162 : vector<1x128xf32>
      %cst_77 = arith.constant 2.500000e-02 : f32
      %164 = vector.broadcast %cst_77 : f32 to vector<1x128xf32>
      %165 = arith.mulf %159, %164 : vector<1x128xf32>
      %cst_78 = arith.constant 2.500000e-02 : f32
      %166 = vector.broadcast %cst_78 : f32 to vector<1x128xf32>
      %167 = arith.mulf %163, %166 : vector<1x128xf32>
      %168 = arith.mulf %165, %165 : vector<1x128xf32>
      %169 = arith.subf %167, %168 : vector<1x128xf32>
      %cst_79 = arith.constant 0.000000e+00 : f32
      %170 = vector.broadcast %cst_79 : f32 to vector<1x128xf32>
      %171 = arith.maximumf %169, %170 : vector<1x128xf32>
      %cst_80 = arith.constant 9.99999974E-6 : f32
      %172 = vector.broadcast %cst_80 : f32 to vector<1x128xf32>
      %173 = arith.addf %171, %172 : vector<1x128xf32>
      %174 = math.rsqrt %173 : vector<1x128xf32>
      %175 = vector.broadcast %165 : vector<1x128xf32> to vector<48x128xf32>
      %176 = arith.subf %147, %175 : vector<48x128xf32>
      %177 = vector.broadcast %174 : vector<1x128xf32> to vector<48x128xf32>
      %178 = arith.mulf %176, %177 : vector<48x128xf32>
      %cst_81 = arith.constant 0.000000e+00 : f32
      %179 = vector.broadcast %cst_81 : f32 to vector<48x128xf32>
      %180 = arith.maximumf %178, %179 : vector<48x128xf32>
      %181 = arith.truncf %180 : vector<48x128xf32> to vector<48x128xbf16>
      %c0_82 = arith.constant 0 : index
      %c0_83 = arith.constant 0 : index
      %182 = vector.load %arg4[%c0_82, %c0_83] : memref<128x128xbf16, #tpu.memory_space<vmem>>, vector<128x128xbf16>
      %cst_84 = arith.constant dense<0.000000e+00> : vector<48x128xf32>
      %183 = tpu.matmul %181, %182, %cst_84 {dimension_numbers = #tpu.dot_dimension_numbers<[1], [0], [0], [1], [0, 0, 1, 1], [], []>} : vector<48x128xbf16>, vector<128x128xbf16>, vector<48x128xf32> -> vector<48x128xf32>
      %c0_85 = arith.constant 0 : index
      %c0_86 = arith.constant 0 : index
      %184 = vector.load %arg5[%c0_85, %c0_86] : memref<1x128xf32, #tpu.memory_space<vmem>>, vector<1x128xf32>
      %185 = vector.broadcast %184 : vector<1x128xf32> to vector<48x128xf32>
      %186 = arith.addf %183, %185 : vector<48x128xf32>
      %187 = arith.truncf %186 : vector<48x128xf32> to vector<48x128xbf16>
      %c0_87 = arith.constant 0 : index
      %c0_88 = arith.constant 0 : index
      %188 = vector.load %arg6[%c0_87, %c0_88] : memref<48x128xbf16, #tpu.memory_space<vmem>>, vector<48x128xbf16>
      tpu.vector_store %arg6[%c0_87, %c0_88], %187 {strides = array<i32>} : memref<48x128xbf16, #tpu.memory_space<vmem>>, vector<48x128xbf16>,
    } else {
    }
    return
  }
  func.func @transform_0(%arg0: i32) -> (i32, i32) {
    %c0_i32 = arith.constant 0 : i32
    %c0_i32_0 = arith.constant 0 : i32
    return %arg0, %c0_i32 : i32, i32
  }
  func.func @transform_1(%arg0: i32) -> (i32, i32) {
    %c0_i32 = arith.constant 0 : i32
    %c0_i32_0 = arith.constant 0 : i32
    %c0_i32_1 = arith.constant 0 : i32
    return %c0_i32, %c0_i32_0 : i32, i32
  }
  func.func @transform_2(%arg0: i32) -> (i32, i32, i32) {
    %c0_i32 = arith.constant 0 : i32
    %c0_i32_0 = arith.constant 0 : i32
    %c0_i32_1 = arith.constant 0 : i32
    %c0_i32_2 = arith.constant 0 : i32
    return %c0_i32, %c0_i32_0, %c0_i32_1 : i32, i32, i32
  }
  func.func @transform_3(%arg0: i32) -> (i32, i32) {
    %c0_i32 = arith.constant 0 : i32
    %c0_i32_0 = arith.constant 0 : i32
    %c0_i32_1 = arith.constant 0 : i32
    return %c0_i32, %c0_i32_0 : i32, i32
  }
  func.func @transform_4(%arg0: i32) -> (i32, i32) {
    %c0_i32 = arith.constant 0 : i32
    %c0_i32_0 = arith.constant 0 : i32
    %c0_i32_1 = arith.constant 0 : i32
    return %c0_i32, %c0_i32_0 : i32, i32
  }
  func.func @transform_5(%arg0: i32) -> (i32, i32) {
    %c0_i32 = arith.constant 0 : i32
    %c0_i32_0 = arith.constant 0 : i32
    %c0_i32_1 = arith.constant 0 : i32
    return %c0_i32, %c0_i32_0 : i32, i32
  }
}

</mosaic_0001>

<bundles_post_ra>
// kernel: tpu_custom_call.1
= control target key start
LH: loop header
LB: loop body
LE: loop exit
PB: predicated region body
PF: predicated region fallthrough
CT: control target
= control target key end

     0   :  { %10 = vsyncpa [#allocation6], 0  ;;  %s2756_s0 = inlined_call_operand.hbm [shape: f32[40,784], index: 0, kind: input, shape index: {}]   ;;  %s2757_s1 = inlined_call_operand.hbm [shape: bf16[784,128], index: 1, kind: input, shape index: {}]   ;;  %s2758_s2 = inlined_call_operand.hbm [shape: bf16[3,128,128], index: 2, kind: input, shape index: {}]   ;;  %s2759_s3 = inlined_call_operand.hbm [shape: bf16[128,128], index: 3, kind: input, shape index: {}]   ;;  %s2760_s4 = inlined_call_operand.vmem [shape: f32[1,128], index: 4, kind: input, shape index: {}]   ;;  %s2761_s5 = inlined_call_operand.hbm [shape: bf16[48,128], index: 5, kind: output, shape index: {}]  }
   0x1   :  { %12 = vsyncpa [#allocation6 + $0x1], 0 }
   0x2   :  { %13 = vsyncpa [#allocation9], 0 }
   0x3   :  { %14 = vsyncpa [#allocation12], 0 }
   0x4   :  { %15 = vsyncpa [#allocation7], 0  ;;  %s2467_s18 = smov 0   ;;  %s2469_s19 = smov 0  }
   0x5   :  { %s2471_s20 = smov 0   ;;  %s2473_s21 = smov 0  }
   0x6 LB: > { %s2486_s22 = sadd.s32 4294967295, %s2423_s21   ;;  %s2489_s23 = sadd.s32 1, %s2423_s21   ;;  %s2423_s21 = sphi %s2473_s21, %s2771_s21   ;;  %s2419_s20 = sphi %s2471_s20, %s2770_s20   ;;  %s2415_s19 = sphi %s2469_s19, %s2769_s19   ;;  %s2411_s18 = sphi %s2467_s18, %s2768_s18  }
   0x7   : > { %s25_s24 = ssub.s32 %s2423_s21, %s2489_s23  ;;  %s28_s25 = sadd.s32 1, %s2419_s20 }
   0x8   : > { %p26_p0 = scmp.eq.s32.totalorder %s25_s24, 0  ;;  %p35_p1 = scmp.ne.s32.totalorder %s2419_s20, %s2415_s19 }
   0x9   : > { %p36_p2 = scmp.eq.s32.totalorder %s2423_s21, 0  ;;  %p41_p3 = scmp.ne.s32.totalorder %s2415_s19, %s2411_s18 }
   0xa   : > { %s2499_s26 = scalar_select %p26_p0, %s2419_s20, %s28_s25  }
   0xb   : > { %p2501_p4 = por %p36_p2, %p35_p1  ;;  %p42_p5 = scmp.eq.s32.totalorder %s2486_s22, 0 }
   0xc   : > { %p1656_p6 = scmp.ge.s32.totalorder %s2423_s21, 1  ;;  %p157_p7 = scmp.lt.s32.totalorder %s2423_s21, 4 }
   0xd   : > { %p2510_p8 = por %p42_p5, %p41_p3  ;;  %s168_s7 = sshll.u32 %s2757_s1, 4  ;;  %s169_s7 = int_to_ptr.hbm [resolvable:$true] %s168_s7 }
   0xe   : > { %p2515_p10 = pnand %p1656_p6, %p157_p7  ;;  %s2425_s8 = smov [#allocation8]  }
   0xf   : > { %s170_s9 = sshll.u32 %s2425_s8, 4  ;;  %s182_s13 = sshll.u32 %s2758_s2, 4  ;;  %s171_s9 = int_to_ptr.vmem [resolvable:$true] %s170_s9  ;;  %s183_s13 = int_to_ptr.hbm [resolvable:$true] %s182_s13 }
  0x10   : > { %p2150_p11 = pneg %p2515_p10  ;;  %s2426_s14 = smov 64  }
  0x11   : > { %s2427_s15 = smov 4   ;;  %s2428_s16 = smov [#allocation10]  }
  0x12   : > { %p2526_p12 = pnand %p2150_p11, %p42_p5  ;;  %s184_s17 = sshll.u32 %s2428_s16, 4  ;;  %s185_s17 = int_to_ptr.vmem [resolvable:$true] %s184_s17 }
  0x13   : > { %s196_s25 = sshll.u32 %s2759_s3, 4  ;;  %s2429_s30 = smov [#allocation11]   ;;  %s197_s25 = int_to_ptr.hbm [resolvable:$true] %s196_s25 }
  0x14   : > { %2153 = dma.hbm_to_vmem [thread:$0]  (!%p2526_p12), %s169_s7, 6272, %s171_s9, [#allocation9], %s2426_s14, %s2426_s14, %s2427_s15  }
  0x15   : > { %2156 = dma.hbm_to_vmem [thread:$0]  (!%p2526_p12), %s183_s13, 3072, %s185_s17, [#allocation9], %s2426_s14, %s2426_s14, %s2427_s15  }
  0x16   : > { %s198_s6 = sshll.u32 %s2429_s30, 4  ;;  %p1660_p13 = scmp.ge.s32.totalorder %s2423_s21, 3  ;;  %s199_s6 = int_to_ptr.vmem [resolvable:$true] %s198_s6 }
  0x17   : > { %2159 = dma.hbm_to_vmem [thread:$0]  (!%p2526_p12), %s197_s25, 1024, %s199_s6, [#allocation12], %s2426_s14, %s2426_s14, %s2427_s15  }
  0x18   : > { %211 = sbr.rel (%p1660_p13) target bundleno = 70 (0x46), region = 32 }
  0x1d   : > { %214 = sbr.rel (!%p2501_p4) target bundleno = 70 (0x46), region = 36  ;;  %s215_s7 = sand.u32 (%p2501_p4), 1, %s2419_s20  }
  0x1e   : > { %s1661_s8 = sshll.u32 (%p2501_p4), %s2423_s21, 1  ;;  %s2130_s9 = smul.u32 (%p2501_p4), 112, %s215_s7 }
  0x1f   : > { %s221_s11 = ssub.s32 (%p2501_p4), 5, %s1661_s8  ;;  %s2547_s17 = scalar_lea.sflag (%p2501_p4), [#allocation6], %s215_s7 }
  0x20   : > { %p222_p0 = scmp.lt.s32.totalorder (%p2501_p4), %s221_s11, 2  ;;  %s219_s10 = scalar_lea.vmem (%p2501_p4), [#allocation5], %s2130_s9 }
  0x22   : > { %s2773_s11 = smov (!%p222_p0, %s221_s11), 2 }
  0x23   : > { %s1663_s12 = smul.u32 56, %s2773_s11 }
  0x25   : > { %s226_s13 = ssub.s32 112, %s1663_s12 }
  0x26   : > { %s227_s16 = sshll.u32 %s226_s13, 4 }
  0x27   : > { %228 = vsyncadd %s2547_s17, %s227_s16  ;;  %p2550_p1 = scmp.ne.s32.totalorder %s1663_s12, 0  ;;  %s2131_s14 = smul.u32 112, %s2423_s21 }
  0x28   : > { %s2555_s15 = sshll.u32 %s219_s10, 4  ;;  %s2557_s18 = smul.u32 896, %s2773_s11  ;;  %s237_s15 = int_to_ptr.vmem [resolvable:$true] %s2555_s15 }
  0x29   : > { %s232_s30 = scalar_lea.hbm %s2756_s0, %s2131_s14  ;;  %s2321_s16 = scalar_lea.hbm %s2756_s0, 280 }
  0x2a   : > { %s234_s6 = sshll.u32 %s232_s30, 4  ;;  %s2312_s21 = sshrl.u32 %s2557_s18, 4  ;;  %s2563_s6 = int_to_ptr.hbm [resolvable:$true] %s234_s6 }
  0x2b   : > { %s2310_s7 = sshra.s32 %s2563_s6, 4  ;;  %s2348_s8 = sshll.u32 %s2312_s21, 4  ;;  %s2311_s7 = int_to_ptr.hbm [resolvable:$true] %s2310_s7 }
  0x2c   : > { %p2314_p2 = scmp.ne.s32.totalorder %s2348_s8, %s2557_s18  ;;  %s2315_s9 = sadd.s32 1, %s2312_s21 }
  0x2d   : > { %p2322_p7 = scmp.lt.s32.totalorder %s2311_s7, %s2756_s0 }
  0x2e   : > { %s2775_s9 = smov (!%p2314_p2, %s2315_s9), %s2312_s21 }
  0x2f   : > { %s2317_s11 = scalar_lea.hbm %s2311_s7, %s2775_s9 }
  0x30   : > { %p2318_p3 = scmp.ne.s32.totalorder %s2311_s7, %s2317_s11  ;;  %p2323_p11 = scmp.lt.s32.totalorder %s2321_s16, %s2317_s11 }
  0x32   : > { %p2319_p4 = pnand %p2318_p3, %p2550_p1  ;;  %p2324_p12 = por %p2323_p11, %p2322_p7 }
  0x34   : > { %p2320_p6 = pneg %p2319_p4 }
  0x36   : > { %p2325_p13 = pnand %p2324_p12, %p2320_p6 }
  0x38   : > { %2328 = shalt.err (!%p2325_p13)
}
  0x39   : > { %s2329_s24 = sshra.s32 %s237_s15, 4  ;;  %s2430_s30 = smov [#allocation5]   ;;  %s2330_s24 = int_to_ptr.vmem [resolvable:$true] %s2329_s24 }
  0x3a   : > { %s2336_s25 = scalar_lea.vmem %s2330_s24, %s2775_s9  ;;  %s2340_s21 = scalar_lea.vmem %s2430_s30, 224 }
  0x3b   : > { %p2337_p0 = scmp.ne.s32.totalorder %s2330_s24, %s2336_s25  ;;  %p2342_p4 = scmp.lt.s32.totalorder %s2340_s21, %s2336_s25 }
  0x3d   : > { %p2338_p2 = pnand %p2337_p0, %p2550_p1 }
  0x3f   : > { %p2339_p3 = pneg %p2338_p2 }
  0x41   : > { %p2344_p9 = pnand %p2342_p4, %p2339_p3 }
  0x43   : > { %2347 = shalt.err (!%p2344_p9)
}
  0x44   : > { %s2431_s7 = smov 896   ;;  %s2432_s8 = smov 56  }
  0x45   : > { %242 = dma.hbm_to_vmem [thread:$0]  (%p2550_p1), %s2563_s6, %s2557_s18, %s237_s15, %s2547_s17, %s2431_s7, %s2431_s7, %s2432_s8  }
  0x46 PF: > { %248 = sbr.rel (%p2515_p10) target bundleno = 1180 (0x49c), region = 40  ;;  %s250_s9 = sand.u32 (!%p2515_p10), 1, %s2415_s19  }
  0x47   : > { %s2132_s11 = smul.u32 (!%p2515_p10), 112, %s250_s9  ;;  %s251_s12 = scalar_lea.sflag (!%p2515_p10), [#allocation6], %s250_s9 }
  0x49   : > { %s2590_s13 = scalar_lea.vmem (!%p2515_p10), [#allocation5], %s2132_s11 }
  0x4b   : > { %2394 = dma.done.wait (%p2510_p8), %s251_s12, 1792  }
  0x4c   : > { %2396 = vsyncadd (%p2510_p8), %s251_s12, 4294965504 }
  0x4d   : > { %2398 = dma.done.wait (%p42_p5), [#allocation9], 9344  }
  0x4e   : > { %2400 = vsyncadd (%p42_p5), [#allocation9], 4294957952 }
  0x4f   : > { %2402 = dma.done.wait (%p42_p5), [#allocation12], 1024  }
  0x50   : > { %2404 = vsyncadd (%p42_p5), [#allocation12], 4294966272  ;;  %p2767_p9 = scmp.ne.s32.totalorder %s2486_s22, 0 }
  0x52   : > { %302 = sbr.rel (%p2767_p9) target bundleno = 90 (0x5a), region = 60 }
  0x57   : > { %v2433_v0 = vmov 0.0  }
  0x58   : > { %303 = vst [vmem:[#allocation3] sm:$0x1] %v2433_v0 }
  0x59   : > { %304 = vst [vmem:[#allocation4] sm:$0x1] %v2433_v0 }
  0x5a PF: > { %v2012_v1 = vld [vmem:[#allocation8 + $0x38] sm:$0xff]  ;;  %v2011_v5 = vld [vmem:[#allocation8 + $0x30] sm:$0xff]  ;;  %v2010_v9 = vld [vmem:[#allocation8 + $0x28] sm:$0xff]  ;;  %vm718_vm0 = vcmask 130048   ;;  %s1870_s28 = sshll.u32 %s2486_s22, 4  ;;  %p1872_p5 = scmp.ne.s32.totalorder %s2486_s22, 2 }
  0x5b   : > { %v2020_v2 = vld [vmem:[#allocation8 + $0x78] sm:$0xff]  ;;  %722 = vmatpush.bf16.msra.mxu0 %v2012_v1  ;;  %v2019_v6 = vld [vmem:[#allocation8 + $0x70] sm:$0xff]  ;;  %v2018_v10 = vld [vmem:[#allocation8 + $0x68] sm:$0xff]  ;;  %s837_s29 = sshra.s32 %s1870_s28, 3 }
  0x5c   : > { %v2028_v3 = vld [vmem:[#allocation8 + $0xb8] sm:$0xff]  ;;  %736 = vmatpush.bf16.msra.mxu1 %v2020_v2  ;;  %v2027_v7 = vld [vmem:[#allocation8 + $0xb0] sm:$0xff]  ;;  %v2026_v11 = vld [vmem:[#allocation8 + $0xa8] sm:$0xff]  ;;  %s1871_s17 = sshll.u32 %s837_s29, 2 }
  0x5d   : > { %v2036_v4 = vld [vmem:[#allocation8 + $0xf8] sm:$0xff]  ;;  %750 = vmatpush.bf16.msra.mxu2 %v2028_v3  ;;  %v2035_v8 = vld [vmem:[#allocation8 + $0xf0] sm:$0xff]  ;;  %v2034_v12 = vld [vmem:[#allocation8 + $0xe8] sm:$0xff]  ;;  %s840_s27 = scalar_lea.vmem [#allocation2], %s1871_s17 }
  0x5e   : > { %764 = vmatpush.bf16.msra.mxu3 %v2036_v4  ;;  %v2009_v13 = vld [vmem:[#allocation8 + $0x20] sm:$0xff]  ;;  %v2008_v17 = vld [vmem:[#allocation8 + $0x18] sm:$0xff]  ;;  %v2007_v21 = vld [vmem:[#allocation8 + $0x10] sm:$0xff] }
  0x5f   : > { %723 = vmatpush.bf16.msra.mxu0 %v2011_v5  ;;  %v2017_v14 = vld [vmem:[#allocation8 + $0x60] sm:$0xff]  ;;  %v2016_v18 = vld [vmem:[#allocation8 + $0x58] sm:$0xff]  ;;  %v2015_v22 = vld [vmem:[#allocation8 + $0x50] sm:$0xff] }
  0x60   : > { %737 = vmatpush.bf16.msra.mxu1 %v2019_v6  ;;  %v2025_v15 = vld [vmem:[#allocation8 + $0xa0] sm:$0xff]  ;;  %v2024_v19 = vld [vmem:[#allocation8 + $0x98] sm:$0xff]  ;;  %v2023_v23 = vld [vmem:[#allocation8 + $0x90] sm:$0xff] }
  0x61   : > { %751 = vmatpush.bf16.msra.mxu2 %v2027_v7  ;;  %v2033_v16 = vld [vmem:[#allocation8 + $0xe0] sm:$0xff]  ;;  %v2032_v20 = vld [vmem:[#allocation8 + $0xd8] sm:$0xff]  ;;  %v2031_v24 = vld [vmem:[#allocation8 + $0xd0] sm:$0xff] }
  0x62   : > { %765 = vmatpush.bf16.msra.mxu3 %v2035_v8  ;;  %v2006_v25 = vld [vmem:[#allocation8 + $0x8] sm:$0xff]  ;;  %v2005_v29 = vld [vmem:[#allocation8] sm:$0xff]  ;;  %v2044_v32 = vld [vmem:[#allocation8 + $0x138] sm:$0xff] }
  0x63   : > { %724 = vmatpush.bf16.msra.mxu0 %v2010_v9  ;;  %v2014_v26 = vld [vmem:[#allocation8 + $0x48] sm:$0xff]  ;;  %v2013_v30 = vld [vmem:[#allocation8 + $0x40] sm:$0xff]  ;;  %v2052_v37 = vld [vmem:[#allocation8 + $0x178] sm:$0xff] }
  0x64   : > { %738 = vmatpush.bf16.msra.mxu1 %v2018_v10  ;;  %v2022_v27 = vld [vmem:[#allocation8 + $0x88] sm:$0xff]  ;;  %v2021_v31 = vld [vmem:[#allocation8 + $0x80] sm:$0xff]  ;;  %v2043_v46 = vld [vmem:[#allocation8 + $0x130] sm:$0xff] }
  0x65   : > { %752 = vmatpush.bf16.msra.mxu2 %v2026_v11  ;;  %v2030_v28 = vld [vmem:[#allocation8 + $0xc8] sm:$0xff]  ;;  %v305_v33 = vld [vmem:[%s2590_s13] sm:$0xff]  ;;  %v307_v38 = vld [vmem:[%s2590_s13 + $0x10] sm:$0xff] }
  0x66   : > { %766 = vmatpush.bf16.msra.mxu3 %v2034_v12  ;;  %v312_v34 = vld [vmem:[%s2590_s13 + $0x38] sm:$0xff]  ;;  %v306_v35 = vld [vmem:[%s2590_s13 + $0x8] sm:$0xff]  ;;  %v313_v36 = vld [vmem:[%s2590_s13 + $0x40] sm:$0xff] }
  0x67   : > { %725 = vmatpush.bf16.msra.mxu0 %v2009_v13  ;;  %v314_v39 = vld [vmem:[%s2590_s13 + $0x48] sm:$0xff]  ;;  %v2029_v40 = vld [vmem:[#allocation8 + $0xc0] sm:$0xff]  ;;  %v308_v41 = vld [vmem:[%s2590_s13 + $0x18] sm:$0xff]  ;;  %v319_v43 = vpack.c.bf16 %v312_v34, %v305_v33  ;;  %v320_v44 = vpack.c.bf16 %v313_v36, %v306_v35 }
  0x68   : > { %739 = vmatpush.bf16.msra.mxu1 %v2017_v14  ;;  %v315_v42 = vld [vmem:[%s2590_s13 + $0x50] sm:$0xff]  ;;  %v321_v45 = vpack.c.bf16 %v314_v39, %v307_v38  ;;  %v2042_v50 = vld [vmem:[#allocation8 + $0x128] sm:$0xff]  ;;  %v2040_v54 = vld [vmem:[#allocation8 + $0x118] sm:$0xff] }
  0x69   : > { %753 = vmatpush.bf16.msra.mxu2 %v2025_v15  ;;  %v322_v47 = vpack.c.bf16 %v315_v42, %v308_v41  ;;  %v2051_v48 = vld [vmem:[#allocation8 + $0x170] sm:$0xff]  ;;  %v2053_v49 = vld [vmem:[#allocation8 + $0x180] sm:$0xff]  ;;  %v2050_v51 = vld [vmem:[#allocation8 + $0x168] sm:$0xff] }
  0x6a   : > { %767 = vmatpush.bf16.msra.mxu3 %v2033_v16  ;;  %v2041_v52 = vld [vmem:[#allocation8 + $0x120] sm:$0xff]  ;;  %v318_v56 = vld [vmem:[%s2590_s13 + $0x68] sm:$0xff]  ;;  %v2039_v59 = vld [vmem:[#allocation8 + $0x110] sm:$0xff]  ;;  %v820_v16 = vlaneseq }
  0x6b   : > { %726 = vmatpush.bf16.msra.mxu0 %v2008_v17  ;;  %v2049_v53 = vld [vmem:[#allocation8 + $0x160] sm:$0xff]  ;;  %v2048_v57 = vld [vmem:[#allocation8 + $0x158] sm:$0xff]  ;;  %v2047_v60 = vld [vmem:[#allocation8 + $0x150] sm:$0xff] }
  0x6c   : > { %740 = vmatpush.bf16.msra.mxu1 %v2016_v18  ;;  %v311_v55 = vld [vmem:[%s2590_s13 + $0x30] sm:$0xff]  ;;  %v2038_v61 = vld [vmem:[#allocation8 + $0x108] sm:$0xff]  ;;  %v309_v0 = vld [vmem:[%s2590_s13 + $0x20] sm:$0xff] }
  0x6d   : > { %754 = vmatpush.bf16.msra.mxu2 %v2024_v19  ;;  %v325_v58 = vpack.c.bf16 %v318_v56, %v311_v55  ;;  %v2046_v62 = vld [vmem:[#allocation8 + $0x148] sm:$0xff]  ;;  %v2037_v63 = vld [vmem:[#allocation8 + $0x100] sm:$0xff]  ;;  %v843_v55 = vld [vmem:[#allocation3] sm:$0x1] }
  0x6e   : > { %768 = vmatpush.bf16.msra.mxu3 %v2032_v20  ;;  %v316_v1 = vld [vmem:[%s2590_s13 + $0x58] sm:$0xff]  ;;  %v2045_v2 = vld [vmem:[#allocation8 + $0x140] sm:$0xff]  ;;  %v310_v3 = vld [vmem:[%s2590_s13 + $0x28] sm:$0xff] }
  0x6f   : > { %727 = vmatpush.bf16.msra.mxu0 %v2007_v21  ;;  %v317_v4 = vld [vmem:[%s2590_s13 + $0x60] sm:$0xff]  ;;  %v323_v5 = vpack.c.bf16 %v316_v1, %v309_v0 }
  0x70   : > { %741 = vmatpush.bf16.msra.mxu1 %v2015_v22  ;;  %v324_v6 = vpack.c.bf16 %v317_v4, %v310_v3 }
  0x71   : > { %755 = vmatpush.bf16.msra.mxu2 %v2023_v23  ;;  %v821_v23 = vshrl.u32 %v820_v16, 7 }
  0x72   : > { %769 = vmatpush.bf16.msra.mxu3 %v2031_v24 }
  0x73   : > { %728 = vmatpush.bf16.msra.mxu0 %v2006_v25  ;;  %v824_v25 = vstv %s1870_s28 }
  0x74   : > { %742 = vmatpush.bf16.msra.mxu1 %v2014_v26 }
  0x75   : > { %756 = vmatpush.bf16.msra.mxu2 %v2022_v27  ;;  %v822_v27 = vadd.s32 8, %v821_v23 }
  0x76   : > { %770 = vmatpush.bf16.msra.mxu3 %v2030_v28 }
  0x77   : > { %729 = vmatpush.bf16.msra.mxu0 %v2005_v29  ;;  %v825_v29 = vadd.s32 %v824_v25, %v821_v23 }
  0x78   : > { %743 = vmatpush.bf16.msra.mxu1 %v2013_v30 }
  0x79   : > { %757 = vmatpush.bf16.msra.mxu2 %v2021_v31  ;;  %vm827_vm1 = vcmp.lt.s32.totalorder %v825_v29, 40 }
  0x7a   : > { %771 = vmatpush.bf16.msra.mxu3 %v2029_v40  ;;  %730 = vmatmul.bf16.vlgmr.msra.gmra.mxu0 %v319_v43 }
  0x7b   : > { %778 = vmatpush.bf16.msrb.mxu0 %v2044_v32  ;;  %744 = vmatmul.bf16.vlgmr.msra.gmra.mxu1 %v320_v44  ;;  %v826_v32 = vadd.s32 %v824_v25, %v822_v27 }
  0x7c   : > { %792 = vmatpush.bf16.msrb.mxu1 %v2052_v37  ;;  %758 = vmatmul.bf16.vlgmr.msra.gmra.mxu2 %v321_v45 }
  0x7d   : > { %772 = vmatmul.bf16.vlgmr.msra.gmra.mxu3 %v322_v47  ;;  %813 = vmatpush.bf16.msrb.mxu2 %v2053_v49  ;;  %vm828_vm2 = vcmp.lt.s32.totalorder %v826_v32, 40 }
  0x7f   : > { %779 = vmatpush.bf16.msrb.mxu0 %v2043_v46 }
  0x80   : > { %793 = vmatpush.bf16.msrb.mxu1 %v2051_v48 }
  0x83   : > { %780 = vmatpush.bf16.msrb.mxu0 %v2042_v50 }
  0x84   : > { %794 = vmatpush.bf16.msrb.mxu1 %v2050_v51 }
  0x87   : > { %781 = vmatpush.bf16.msrb.mxu0 %v2041_v52 }
  0x88   : > { %795 = vmatpush.bf16.msrb.mxu1 %v2049_v53 }
  0x8b   : > { %782 = vmatpush.bf16.msrb.mxu0 %v2040_v54 }
  0x8c   : > { %796 = vmatpush.bf16.msrb.mxu1 %v2048_v57  ;;  %1869 = vmatmul.msk.bf16.vlgmr.msrb.gmra.mxu2 %vm718_vm0, %v325_v58  ;;  %v853_v58 = vld [vmem:[#allocation4] sm:$0x1] }
  0x8f   : > { %783 = vmatpush.bf16.msrb.mxu0 %v2039_v59 }
  0x90   : > { %797 = vmatpush.bf16.msrb.mxu1 %v2047_v60 }
  0x93   : > { %784 = vmatpush.bf16.msrb.mxu0 %v2038_v61 }
  0x94   : > { %798 = vmatpush.bf16.msrb.mxu1 %v2046_v62 }
  0x97   : > { %785 = vmatpush.bf16.msrb.mxu0 %v2037_v63 }
  0x98   : > { %799 = vmatpush.bf16.msrb.mxu1 %v2045_v2 }
  0x9a   : > { %786 = vmatmul.bf16.vlgmr.msrb.gmra.mxu0 %v323_v5 }
  0x9b   : > { %800 = vmatmul.bf16.vlgmr.msrb.gmra.mxu1 %v324_v6 }
  0xf7   : > { %v731_v7 = vpop.f32.mrf.mxu0 }
  0xf8   : > { %v745_v8 = vpop.f32.mrf.mxu1 }
  0xf9   : > { %v746_v10 = vadd.f32 %v745_v8, %v731_v7 }
  0xff   : > { %v759_v9 = vpop.f32.mrf.mxu2  ;;  %v733_v11 = vpop.f32.mrf.mxu0 }
 0x100   : > { %v747_v12 = vpop.f32.mrf.mxu1  ;;  %v773_v13 = vpop.f32.mrf.mxu3  ;;  %v760_v15 = vadd.f32 %v759_v9, %v746_v10 }
 0x101   : > { %v748_v18 = vadd.f32 %v747_v12, %v733_v11 }
 0x102   : > { %v774_v17 = vadd.f32 %v773_v13, %v760_v15 }
 0x107   : > { %v761_v14 = vpop.f32.mrf.mxu2 }
 0x108   : > { %v762_v24 = vadd.f32 %v761_v14, %v748_v18  ;;  %v775_v26 = vpop.f32.mrf.mxu3 }
 0x10a   : > { %v776_v30 = vadd.f32 %v775_v26, %v762_v24 }
 0x10f   : > { %v815_v22 = vpop.f32.mrf.mxu2 }
 0x117   : > { %v787_v19 = vpop.f32.mrf.mxu0  ;;  %v817_v37 = vpop.f32.mrf.mxu2 }
 0x118   : > { %v788_v20 = vadd.f32 %v787_v19, %v774_v17  ;;  %v801_v21 = vpop.f32.mrf.mxu1 }
 0x11a   : > { %v802_v28 = vadd.f32 %v801_v21, %v788_v20 }
 0x11c   : > { %v816_v33 = vadd.f32 %v815_v22, %v802_v28 }
 0x11e   : > { %v833_v38 = vsel %vm827_vm1, %v816_v33, 0.0 }
 0x11f   : > { %v789_v31 = vpop.f32.mrf.mxu0  ;;  %v854_v41 = vmul.f32 %v833_v38, %v833_v38 }
 0x120   : > { %v790_v34 = vadd.f32 %v789_v31, %v776_v30  ;;  %v803_v35 = vpop.f32.mrf.mxu1 }
 0x122   : > { %v804_v36 = vadd.f32 %v803_v35, %v790_v34 }
 0x124   : > { %v818_v39 = vadd.f32 %v817_v37, %v804_v36 }
 0x126   : > { %v834_v40 = vsel %vm828_vm2, %v818_v39, 0.0 }
 0x127   : > { %v2089_v42 = vpack.c.bf16 %v834_v40, %v833_v38  ;;  %v844_v43 = vadd.f32 %v834_v40, %v833_v38  ;;  %v855_v44 = vmul.f32 %v834_v40, %v834_v40 }
 0x129   : > { %2090 = vst [vmem:[%s840_s27] sm:$0xff] %v2089_v42   ;;  %v845_v45 = vrot.slane %v844_v43, 4  ;;  %v856_v46 = vadd.f32 %v855_v44, %v854_v41 }
 0x12b   : > { %v846_v47 = vadd.f32 %v845_v45, %v844_v43  ;;  %v857_v48 = vrot.slane %v856_v46, 4 }
 0x12d   : > { %v847_v49 = vrot.slane %v846_v47, 2  ;;  %v858_v50 = vadd.f32 %v857_v48, %v856_v46 }
 0x12f   : > { %v848_v51 = vadd.f32 %v847_v49, %v846_v47  ;;  %v859_v52 = vrot.slane %v858_v50, 2 }
 0x131   : > { %v849_v53 = vrot.slane %v848_v51, 1  ;;  %v860_v54 = vadd.f32 %v859_v52, %v858_v50 }
 0x133   : > { %v850_v56 = vadd.f32 %v849_v53, %v848_v51  ;;  %v861_v57 = vrot.slane %v860_v54, 1 }
 0x135   : > { %v851_v59 = vadd.f32 %v850_v56, %v843_v55  ;;  %v862_v60 = vadd.f32 %v861_v57, %v860_v54  ;;  %868 = sbr.rel (%p1872_p5) target bundleno = 1174 (0x496), region = 64 }
 0x137   : > { %852 = vst [vmem:[#allocation3] sm:$0x1] %v851_v59  ;;  %v863_v61 = vadd.f32 %v862_v60, %v853_v58 }
 0x139   : > { %864 = vst [vmem:[#allocation4] sm:$0x1] %v863_v61 }
 0x13a   : > { %v2061_v62 = vld [vmem:[#allocation10 + $0x38] sm:$0xff]  ;;  %v2060_v63 = vld [vmem:[#allocation10 + $0x30] sm:$0xff]  ;;  %v2059_v5 = vld [vmem:[#allocation10 + $0x28] sm:$0xff] }
 0x13b   : > { %993 = vmatpush.bf16.msra.mxu0 %v2061_v62  ;;  %2122 = vmatpush.bf16.msra.mxu2 %v2061_v62  ;;  %v2058_v8 = vld [vmem:[#allocation10 + $0x20] sm:$0xff]  ;;  %v2057_v10 = vld [vmem:[#allocation10 + $0x18] sm:$0xff]  ;;  %v2056_v11 = vld [vmem:[#allocation10 + $0x10] sm:$0xff] }
 0x13c   : > { %1046 = vmatpush.bf16.msra.mxu1 %v2061_v62  ;;  %v2092_v14 = vld [vmem:[#allocation2] sm:$0xff]   ;;  %v2055_v15 = vld [vmem:[#allocation10 + $0x8] sm:$0xff] }
 0x13d   : > { %v2119_v17 = vld [vmem:[#allocation2 + $0x10] sm:$0xff]   ;;  %v2093_v19 = vunpack.c.l.bf16 %v2092_v14  ;;  %v2094_v20 = vunpack.c.h.bf16 %v2092_v14  ;;  %v2054_v24 = vld [vmem:[#allocation10] sm:$0xff]  ;;  %v2069_v61 = vld [vmem:[#allocation10 + $0x78] sm:$0xff] }
 0x13e   : > { %v869_v0 = vld [vmem:[#allocation3] sm:$0x1]  ;;  %v2101_v22 = vunpack.c.l.bf16 %v2119_v17  ;;  %v2102_v23 = vunpack.c.h.bf16 %v2119_v17  ;;  %v2118_v34 = vld [vmem:[#allocation2 + $0x8] sm:$0xff]   ;;  %1224 = vmatpush.bf16.msra.mxu3 %v2069_v61  ;;  %v2065_v17 = vld [vmem:[#allocation10 + $0x58] sm:$0xff] }
 0x13f   : > { %v871_v2 = vmul.f32 0.025, %v869_v0  ;;  %994 = vmatpush.bf16.msra.mxu0 %v2060_v63  ;;  %2123 = vmatpush.bf16.msra.mxu2 %v2060_v63  ;;  %v2097_v40 = vunpack.c.l.bf16 %v2118_v34  ;;  %v2098_v41 = vunpack.c.h.bf16 %v2118_v34  ;;  %v2068_v0 = vld [vmem:[#allocation10 + $0x70] sm:$0xff] }
 0x140   : > { %v870_v1 = vld [vmem:[#allocation4] sm:$0x1]  ;;  %1047 = vmatpush.bf16.msra.mxu1 %v2060_v63 }
 0x141   : > { %v872_v3 = vmul.f32 0.025, %v870_v1  ;;  %v873_v4 = vmul.f32 %v871_v2, %v871_v2  ;;  %v900_v21 = vperm.slane %v871_v2, 0  ;;  %v923_v26 = vsub.f32 0.0, %v871_v2 }
 0x142   : > { %1225 = vmatpush.bf16.msra.mxu3 %v2068_v0 }
 0x143   : > { %v874_v6 = vsub.f32 %v872_v3, %v873_v4  ;;  %995 = vmatpush.bf16.msra.mxu0 %v2059_v5  ;;  %2124 = vmatpush.bf16.msra.mxu2 %v2059_v5  ;;  %v902_v28 = vsub.f32 %v2093_v19, %v900_v21  ;;  %v903_v29 = vsub.f32 %v2094_v20, %v900_v21 }
 0x144   : > { %1048 = vmatpush.bf16.msra.mxu1 %v2059_v5  ;;  %v906_v30 = vsub.f32 %v2101_v22, %v900_v21  ;;  %v907_v31 = vsub.f32 %v2102_v23, %v900_v21  ;;  %v904_v50 = vsub.f32 %v2097_v40, %v900_v21  ;;  %v905_v51 = vsub.f32 %v2098_v41, %v900_v21  ;;  %v2067_v5 = vld [vmem:[#allocation10 + $0x68] sm:$0xff]  ;;  %v2064_v23 = vld [vmem:[#allocation10 + $0x50] sm:$0xff] }
 0x145   : > { %v875_v7 = vmax.f32 %v874_v6, 0.0 }
 0x146   : > { %1226 = vmatpush.bf16.msra.mxu3 %v2067_v5 }
 0x147   : > { %v876_v9 = vadd.f32 1e-05, %v875_v7  ;;  %996 = vmatpush.bf16.msra.mxu0 %v2058_v8  ;;  %2125 = vmatpush.bf16.msra.mxu2 %v2058_v8 }
 0x148   : > { %1049 = vmatpush.bf16.msra.mxu1 %v2058_v8 }
 0x149   : > { %2212 = vrsqrt.f32 %v876_v9  ;;  %vm883_vm3 = vweird.f32 %v876_v9 }
 0x14b   : > { %997 = vmatpush.bf16.msra.mxu0 %v2057_v10  ;;  %2126 = vmatpush.bf16.msra.mxu2 %v2057_v10 }
 0x14c   : > { %1050 = vmatpush.bf16.msra.mxu1 %v2057_v10 }
 0x14f   : > { %v2213_v12 = vpop.eup %2212  ;;  %998 = vmatpush.bf16.msra.mxu0 %v2056_v11  ;;  %2127 = vmatpush.bf16.msra.mxu2 %v2056_v11 }
 0x150   : > { %v878_v13 = vmul.f32 %v2213_v12, %v876_v9  ;;  %1051 = vmatpush.bf16.msra.mxu1 %v2056_v11  ;;  %vm884_vm4 = vweird.f32 %v2213_v12  ;;  %v2066_v9 = vld [vmem:[#allocation10 + $0x60] sm:$0xff] }
 0x151   : > { %vm885_vm5 = vmor %vm883_vm3, %vm884_vm4  ;;  %1227 = vmatpush.bf16.msra.mxu3 %v2066_v9 }
 0x152   : > { %v879_v16 = vmul.f32 %v2213_v12, %v878_v13 }
 0x153   : > { %999 = vmatpush.bf16.msra.mxu0 %v2055_v15  ;;  %2128 = vmatpush.bf16.msra.mxu2 %v2055_v15 }
 0x154   : > { %v880_v18 = vmul.f32 0.5, %v879_v16  ;;  %1052 = vmatpush.bf16.msra.mxu1 %v2055_v15 }
 0x155   : > { %1228 = vmatpush.bf16.msra.mxu3 %v2065_v17 }
 0x156   : > { %v881_v25 = vsub.f32 1.5, %v880_v18 }
 0x157   : > { %1000 = vmatpush.bf16.msra.mxu0 %v2054_v24  ;;  %2129 = vmatpush.bf16.msra.mxu2 %v2054_v24 }
 0x158   : > { %v882_v27 = vmul.f32 %v2213_v12, %v881_v25  ;;  %1053 = vmatpush.bf16.msra.mxu1 %v2054_v24 }
 0x159   : > { %1229 = vmatpush.bf16.msra.mxu3 %v2064_v23 }
 0x15a   : > { %v886_v32 = vsel %vm885_vm5, %v2213_v12, %v882_v27 }
 0x15b   : > { %v909_v33 = vperm.slane %v886_v32, 0  ;;  %v924_v35 = vmul.f32 %v923_v26, %v886_v32  ;;  %1171 = vmatpush.bf16.msrb.mxu2 %v2069_v61 }
 0x15d   : > { %v911_v36 = vmul.f32 %v909_v33, %v902_v28  ;;  %v912_v37 = vmul.f32 %v909_v33, %v903_v29  ;;  %v915_v38 = vmul.f32 %v909_v33, %v906_v30  ;;  %v916_v39 = vmul.f32 %v909_v33, %v907_v31  ;;  %v2063_v28 = vld [vmem:[#allocation10 + $0x48] sm:$0xff] }
 0x15e   : > { %v925_v42 = vmax.f32 %v924_v35, 0.0  ;;  %v913_v52 = vmul.f32 %v909_v33, %v904_v50  ;;  %v914_v53 = vmul.f32 %v909_v33, %v905_v51  ;;  %1230 = vmatpush.bf16.msra.mxu3 %v2063_v28  ;;  %v2062_v35 = vld [vmem:[#allocation10 + $0x40] sm:$0xff] }
 0x15f   : > { %v917_v43 = vmax.f32 %v911_v36, 0.0  ;;  %v918_v44 = vmax.f32 %v912_v37, 0.0  ;;  %v921_v45 = vmax.f32 %v915_v38, 0.0  ;;  %v922_v46 = vmax.f32 %v916_v39, 0.0  ;;  %1172 = vmatpush.bf16.msrb.mxu2 %v2068_v0 }
 0x160   : > { %v1045_v47 = vpack.c.bf16 %v925_v42, %v925_v42  ;;  %v919_v54 = vmax.f32 %v913_v52, 0.0  ;;  %v920_v55 = vmax.f32 %v914_v53, 0.0 }
 0x161   : > { %v926_v48 = vpack.c.bf16 %v918_v44, %v917_v43  ;;  %v928_v49 = vpack.c.bf16 %v922_v46, %v921_v45 }
 0x162   : > { %1054 = vmatmul.bf16.vlgmr.msra.gmra.mxu1 %v1045_v47  ;;  %v927_v56 = vpack.c.bf16 %v920_v55, %v919_v54  ;;  %1231 = vmatpush.bf16.msra.mxu3 %v2062_v35 }
 0x163   : > { %1001 = vmatmul.bf16.vlgmr.msra.gmra.mxu0 %v926_v48  ;;  %1011 = vmatmul.bf16.vlgmr.msra.gmra.mxu2 %v928_v49 }
 0x164   : > { %1173 = vmatpush.bf16.msrb.mxu2 %v2067_v5 }
 0x168   : > { %1174 = vmatpush.bf16.msrb.mxu2 %v2066_v9 }
 0x16c   : > { %1175 = vmatpush.bf16.msrb.mxu2 %v2065_v17 }
 0x170   : > { %1176 = vmatpush.bf16.msrb.mxu2 %v2064_v23 }
 0x173   : > { %1006 = vmatmul.bf16.gmra.mxu0 %v927_v56 }
 0x174   : > { %1177 = vmatpush.bf16.msrb.mxu2 %v2063_v28 }
 0x178   : > { %1178 = vmatpush.bf16.msrb.mxu2 %v2062_v35 }
 0x1df   : > { %v2624_v58 = vpop.f32.mrf.mxu1 }
 0x1e0   : > { %v2622_v57 = vpop.f32.mrf.mxu0  ;;  %v1061_v31 = vmul.f32 %v2624_v58, %v2624_v58  ;;  %v1059_v34 = vmul.f32 8.0, %v2624_v58 }
 0x1e1   : > { %v1028_v2 = vmul.f32 %v2622_v57, %v2622_v57 }
 0x1e2   : > { %v1062_v38 = vmul.f32 8.0, %v1061_v31 }
 0x1e6   : > { %v2628_v62 = vpop.f32.mrf.mxu2 }
 0x1e7   : > { %v1057_v60 = vpop.f32.mrf.mxu1  ;;  %v1032_v14 = vmul.f32 %v2628_v62, %v2628_v62 }
 0x1e8   : > { %v2626_v59 = vpop.f32.mrf.mxu0 }
 0x1e9   : > { %v1029_v1 = vmul.f32 %v2626_v59, %v2626_v59  ;;  %v1017_v3 = vadd.f32 %v2626_v59, %v2622_v57 }
 0x1eb   : > { %v1034_v6 = vadd.f32 %v1029_v1, %v1028_v2 }
 0x1ee   : > { %v2646_v13 = vpop.f32.mrf.mxu2 }
 0x1ef   : > { %v1033_v18 = vmul.f32 %v2646_v13, %v2646_v13 }
 0x1f0   : > { %v2630_v63 = vpop.f32.mrf.mxu0 }
 0x1f1   : > { %v1030_v4 = vmul.f32 %v2630_v63, %v2630_v63  ;;  %v1018_v7 = vadd.f32 %v1017_v3, %v2630_v63 }
 0x1f3   : > { %v1035_v10 = vadd.f32 %v1034_v6, %v1030_v4 }
 0x1f8   : > { %v2641_v8 = vpop.f32.mrf.mxu0 }
 0x1f9   : > { %v1019_v11 = vadd.f32 %v1018_v7, %v2641_v8  ;;  %v1031_v12 = vmul.f32 %v2641_v8, %v2641_v8 }
 0x1fb   : > { %v1020_v15 = vadd.f32 %v1019_v11, %v2628_v62  ;;  %v1036_v16 = vadd.f32 %v1035_v10, %v1031_v12 }
 0x1fd   : > { %v1021_v19 = vadd.f32 %v1020_v15, %v2646_v13  ;;  %v1037_v20 = vadd.f32 %v1036_v16, %v1032_v14 }
 0x1ff   : > { %v1022_v21 = vrot.slane %v1021_v19, 4  ;;  %v1038_v22 = vadd.f32 %v1037_v20, %v1033_v18 }
 0x201   : > { %v1023_v24 = vadd.f32 %v1022_v21, %v1021_v19  ;;  %v1039_v25 = vrot.slane %v1038_v22, 4 }
 0x203   : > { %v1040_v26 = vadd.f32 %v1039_v25, %v1038_v22  ;;  %v1024_v27 = vrot.slane %v1023_v24, 2 }
 0x205   : > { %v1025_v29 = vadd.f32 %v1024_v27, %v1023_v24  ;;  %v1041_v30 = vrot.slane %v1040_v26, 2 }
 0x207   : > { %v1026_v32 = vrot.slane %v1025_v29, 1  ;;  %v1042_v33 = vadd.f32 %v1041_v30, %v1040_v26  ;;  %v2076_v26 = vld [vmem:[#allocation10 + $0xb0] sm:$0xff] }
 0x209   : > { %v1027_v36 = vadd.f32 %v1026_v32, %v1025_v29  ;;  %v1043_v37 = vrot.slane %v1042_v33, 1 }
 0x20b   : > { %v1044_v39 = vadd.f32 %v1043_v37, %v1042_v33  ;;  %v1060_v40 = vsub.f32 %v1027_v36, %v1059_v34  ;;  %v2075_v34 = vld [vmem:[#allocation10 + $0xa8] sm:$0xff] }
 0x20d   : > { %v1063_v41 = vsub.f32 %v1044_v39, %v1062_v38  ;;  %v1064_v42 = vmul.f32 0.025, %v1060_v40  ;;  %v2074_v40 = vld [vmem:[#allocation10 + $0xa0] sm:$0xff] }
 0x20f   : > { %v1065_v43 = vmul.f32 0.025, %v1063_v41  ;;  %v1066_v44 = vmul.f32 %v1064_v42, %v1064_v42  ;;  %v1080_v53 = vperm.slane %v1064_v42, 0  ;;  %v1100_v55 = vsub.f32 %v2624_v58, %v1064_v42 }
 0x211   : > { %v1067_v45 = vsub.f32 %v1065_v43, %v1066_v44  ;;  %v1081_v0 = vsub.f32 %v2622_v57, %v1080_v53  ;;  %v1082_v1 = vsub.f32 %v2626_v59, %v1080_v53  ;;  %v1083_v10 = vsub.f32 %v2630_v63, %v1080_v53 }
 0x212   : > { %v1084_v58 = vsub.f32 %v2641_v8, %v1080_v53  ;;  %v1085_v59 = vsub.f32 %v2628_v62, %v1080_v53  ;;  %v1086_v16 = vsub.f32 %v2646_v13, %v1080_v53  ;;  %v2077_v62 = vld [vmem:[#allocation10 + $0xb8] sm:$0xff] }
 0x213   : > { %v1068_v46 = vmax.f32 %v1067_v45, 0.0  ;;  %1402 = vmatpush.bf16.msrb.mxu3 %v2077_v62  ;;  %1349 = vmatpush.bf16.msrb.mxu1 %v2077_v62 }
 0x215   : > { %v1069_v47 = vadd.f32 1e-05, %v1068_v46 }
 0x217   : > { %2214 = vrsqrt.f32 %v1069_v47  ;;  %vm1076_vm7 = vweird.f32 %v1069_v47  ;;  %1403 = vmatpush.bf16.msrb.mxu3 %v2076_v26  ;;  %1350 = vmatpush.bf16.msrb.mxu1 %v2076_v26 }
 0x21b   : > { %1404 = vmatpush.bf16.msrb.mxu3 %v2075_v34  ;;  %1351 = vmatpush.bf16.msrb.mxu1 %v2075_v34 }
 0x21d   : > { %v2215_v48 = vpop.eup %2214 }
 0x21e   : > { %v1071_v49 = vmul.f32 %v2215_v48, %v1069_v47  ;;  %vm1077_vm6 = vweird.f32 %v2215_v48  ;;  %v2073_v47 = vld [vmem:[#allocation10 + $0x98] sm:$0xff] }
 0x21f   : > { %vm1078_vm8 = vmor %vm1076_vm7, %vm1077_vm6  ;;  %1405 = vmatpush.bf16.msrb.mxu3 %v2074_v40  ;;  %1352 = vmatpush.bf16.msrb.mxu1 %v2074_v40 }
 0x220   : > { %v1072_v50 = vmul.f32 %v2215_v48, %v1071_v49 }
 0x222   : > { %v1073_v51 = vmul.f32 0.5, %v1072_v50 }
 0x223   : > { %1406 = vmatpush.bf16.msrb.mxu3 %v2073_v47  ;;  %1353 = vmatpush.bf16.msrb.mxu1 %v2073_v47 }
 0x224   : > { %v1074_v52 = vsub.f32 1.5, %v1073_v51 }
 0x226   : > { %v1075_v54 = vmul.f32 %v2215_v48, %v1074_v52  ;;  %v2072_v52 = vld [vmem:[#allocation10 + $0x90] sm:$0xff] }
 0x227   : > { %1407 = vmatpush.bf16.msrb.mxu3 %v2072_v52  ;;  %1354 = vmatpush.bf16.msrb.mxu1 %v2072_v52 }
 0x228   : > { %v1079_v56 = vsel %vm1078_vm8, %v2215_v48, %v1075_v54 }
 0x229   : > { %v1087_v60 = vperm.slane %v1079_v56, 0  ;;  %v1101_v61 = vmul.f32 %v1100_v55, %v1079_v56 }
 0x22b   : > { %v1102_v2 = vmax.f32 %v1101_v61, 0.0  ;;  %v1088_v3 = vmul.f32 %v1087_v60, %v1081_v0  ;;  %v1089_v4 = vmul.f32 %v1087_v60, %v1082_v1  ;;  %v1090_v11 = vmul.f32 %v1087_v60, %v1083_v10  ;;  %v2071_v61 = vld [vmem:[#allocation10 + $0x88] sm:$0xff] }
 0x22c   : > { %v1091_v12 = vmul.f32 %v1087_v60, %v1084_v58  ;;  %v1092_v17 = vmul.f32 %v1087_v60, %v1085_v59  ;;  %v1093_v18 = vmul.f32 %v1087_v60, %v1086_v16  ;;  %1408 = vmatpush.bf16.msrb.mxu3 %v2071_v61  ;;  %1355 = vmatpush.bf16.msrb.mxu1 %v2071_v61 }
 0x22d   : > { %v1223_v5 = vpack.c.bf16 %v1102_v2, %v1102_v2  ;;  %v1094_v6 = vmax.f32 %v1088_v3, 0.0  ;;  %v1095_v7 = vmax.f32 %v1089_v4, 0.0  ;;  %v1096_v14 = vmax.f32 %v1090_v11, 0.0 }
 0x22e   : > { %v1097_v15 = vmax.f32 %v1091_v12, 0.0  ;;  %v1098_v19 = vmax.f32 %v1092_v17, 0.0  ;;  %v1099_v20 = vmax.f32 %v1093_v18, 0.0 }
 0x22f   : > { %1232 = vmatmul.bf16.vlgmr.msra.gmra.mxu3 %v1223_v5  ;;  %v1103_v9 = vpack.c.bf16 %v1095_v7, %v1094_v6  ;;  %v2070_v6 = vld [vmem:[#allocation10 + $0x80] sm:$0xff] }
 0x230   : > { %v1104_v57 = vpack.c.bf16 %v1097_v15, %v1096_v14  ;;  %v1105_v21 = vpack.c.bf16 %v1099_v20, %v1098_v19  ;;  %1409 = vmatpush.bf16.msrb.mxu3 %v2070_v6  ;;  %1356 = vmatpush.bf16.msrb.mxu1 %v2070_v6 }
 0x231   : > { %1179 = vmatmul.bf16.vlgmr.msrb.gmra.mxu2 %v1103_v9 }
 0x241   : > { %1184 = vmatmul.bf16.gmra.mxu2 %v1104_v57 }
 0x251   : > { %1189 = vmatmul.bf16.gmra.mxu2 %v1105_v21 }
 0x2b2   : > { %v2664_v22 = vpop.f32.mrf.mxu3 }
 0x2b3   : > { %v1239_v55 = vmul.f32 %v2664_v22, %v2664_v22  ;;  %v1237_v0 = vmul.f32 8.0, %v2664_v22 }
 0x2b4   : > { %v2666_v63 = vpop.f32.mrf.mxu2 }
 0x2b5   : > { %v1206_v28 = vmul.f32 %v2666_v63, %v2666_v63  ;;  %v1240_v3 = vmul.f32 8.0, %v1239_v55  ;;  %v2084_v55 = vld [vmem:[#allocation11 + $0x30] sm:$0xff] }
 0x2ba   : > { %v1235_v8 = vpop.f32.mrf.mxu3 }
 0x2bc   : > { %v2668_v23 = vpop.f32.mrf.mxu2 }
 0x2bd   : > { %v1207_v13 = vmul.f32 %v2668_v23, %v2668_v23  ;;  %v1195_v29 = vadd.f32 %v2668_v23, %v2666_v63 }
 0x2bf   : > { %v1212_v31 = vadd.f32 %v1207_v13, %v1206_v28 }
 0x2c4   : > { %v2670_v24 = vpop.f32.mrf.mxu2 }
 0x2c5   : > { %v1208_v30 = vmul.f32 %v2670_v24, %v2670_v24  ;;  %v1196_v32 = vadd.f32 %v1195_v29, %v2670_v24 }
 0x2c7   : > { %v1213_v35 = vadd.f32 %v1212_v31, %v1208_v30 }
 0x2cc   : > { %v2672_v25 = vpop.f32.mrf.mxu2 }
 0x2cd   : > { %v1209_v33 = vmul.f32 %v2672_v25, %v2672_v25  ;;  %v1197_v36 = vadd.f32 %v1196_v32, %v2672_v25 }
 0x2cf   : > { %v1214_v38 = vadd.f32 %v1213_v35, %v1209_v33 }
 0x2d4   : > { %v2676_v27 = vpop.f32.mrf.mxu2 }
 0x2d5   : > { %v1210_v37 = vmul.f32 %v2676_v27, %v2676_v27  ;;  %v1198_v39 = vadd.f32 %v1197_v36, %v2676_v27 }
 0x2d7   : > { %v1215_v42 = vadd.f32 %v1214_v38, %v1210_v37 }
 0x2dc   : > { %v2691_v41 = vpop.f32.mrf.mxu2 }
 0x2dd   : > { %v1199_v43 = vadd.f32 %v1198_v39, %v2691_v41  ;;  %v1211_v44 = vmul.f32 %v2691_v41, %v2691_v41 }
 0x2df   : > { %v1200_v45 = vrot.slane %v1199_v43, 4  ;;  %v1216_v46 = vadd.f32 %v1215_v42, %v1211_v44 }
 0x2e1   : > { %v1201_v48 = vadd.f32 %v1200_v45, %v1199_v43  ;;  %v1217_v49 = vrot.slane %v1216_v46, 4 }
 0x2e3   : > { %v1202_v50 = vrot.slane %v1201_v48, 2  ;;  %v1218_v51 = vadd.f32 %v1217_v49, %v1216_v46  ;;  %v2085_v49 = vld [vmem:[#allocation11 + $0x38] sm:$0xff] }
 0x2e4   : > { %1527 = vmatpush.bf16.msrb.mxu0 %v2085_v49 }
 0x2e5   : > { %v1203_v53 = vadd.f32 %v1202_v50, %v1201_v48  ;;  %v1219_v54 = vrot.slane %v1218_v51, 2 }
 0x2e7   : > { %v1204_v56 = vrot.slane %v1203_v53, 1  ;;  %v1220_v60 = vadd.f32 %v1219_v54, %v1218_v51 }
 0x2e8   : > { %1528 = vmatpush.bf16.msrb.mxu0 %v2084_v55 }
 0x2e9   : > { %v1205_v1 = vadd.f32 %v1204_v56, %v1203_v53  ;;  %v1221_v2 = vrot.slane %v1220_v60, 1 }
 0x2eb   : > { %v1222_v4 = vadd.f32 %v1221_v2, %v1220_v60  ;;  %v1238_v5 = vsub.f32 %v1205_v1, %v1237_v0 }
 0x2ed   : > { %v1241_v7 = vsub.f32 %v1222_v4, %v1240_v3  ;;  %v1242_v9 = vmul.f32 0.025, %v1238_v5  ;;  %v2083_v3 = vld [vmem:[#allocation11 + $0x28] sm:$0xff] }
 0x2ee   : > { %1529 = vmatpush.bf16.msrb.mxu0 %v2083_v3 }
 0x2ef   : > { %v1243_v10 = vmul.f32 0.025, %v1241_v7  ;;  %v1244_v58 = vmul.f32 %v1242_v9, %v1242_v9  ;;  %v1258_v18 = vperm.slane %v1242_v9, 0  ;;  %v1278_v20 = vsub.f32 %v2664_v22, %v1242_v9 }
 0x2f1   : > { %v1245_v11 = vsub.f32 %v1243_v10, %v1244_v58  ;;  %v1264_v8 = vsub.f32 %v2691_v41, %v1258_v18  ;;  %v1259_v26 = vsub.f32 %v2666_v63, %v1258_v18  ;;  %v1260_v28 = vsub.f32 %v2668_v23, %v1258_v18  ;;  %v2082_v58 = vld [vmem:[#allocation11 + $0x20] sm:$0xff] }
 0x2f2   : > { %v1261_v29 = vsub.f32 %v2670_v24, %v1258_v18  ;;  %v1262_v30 = vsub.f32 %v2672_v25, %v1258_v18  ;;  %v1263_v31 = vsub.f32 %v2676_v27, %v1258_v18  ;;  %1530 = vmatpush.bf16.msrb.mxu0 %v2082_v58 }
 0x2f3   : > { %v1246_v12 = vmax.f32 %v1245_v11, 0.0 }
 0x2f5   : > { %v1247_v14 = vadd.f32 1e-05, %v1246_v12 }
 0x2f7   : > { %2216 = vrsqrt.f32 %v1247_v14  ;;  %vm1254_vm10 = vweird.f32 %v1247_v14 }
 0x2fd   : > { %v2217_v15 = vpop.eup %2216 }
 0x2fe   : > { %v1249_v57 = vmul.f32 %v2217_v15, %v1247_v14  ;;  %vm1255_vm9 = vweird.f32 %v2217_v15 }
 0x2ff   : > { %vm1256_vm11 = vmor %vm1254_vm10, %vm1255_vm9 }
 0x300   : > { %v1250_v59 = vmul.f32 %v2217_v15, %v1249_v57  ;;  %v2081_v57 = vld [vmem:[#allocation11 + $0x18] sm:$0xff] }
 0x301   : > { %1531 = vmatpush.bf16.msrb.mxu0 %v2081_v57 }
 0x302   : > { %v1251_v16 = vmul.f32 0.5, %v1250_v59 }
 0x304   : > { %v1252_v17 = vsub.f32 1.5, %v1251_v16 }
 0x306   : > { %v1253_v19 = vmul.f32 %v2217_v15, %v1252_v17 }
 0x308   : > { %v1257_v21 = vsel %vm1256_vm11, %v2217_v15, %v1253_v19  ;;  %v2080_v19 = vld [vmem:[#allocation11 + $0x10] sm:$0xff] }
 0x309   : > { %v1265_v62 = vperm.slane %v1257_v21, 0  ;;  %v1279_v13 = vmul.f32 %v1278_v20, %v1257_v21  ;;  %1532 = vmatpush.bf16.msrb.mxu0 %v2080_v19 }
 0x30b   : > { %v1271_v32 = vmul.f32 %v1265_v62, %v1264_v8  ;;  %v1280_v33 = vmax.f32 %v1279_v13, 0.0  ;;  %v1266_v34 = vmul.f32 %v1265_v62, %v1259_v26  ;;  %v1267_v35 = vmul.f32 %v1265_v62, %v1260_v28  ;;  %v2079_v28 = vld [vmem:[#allocation11 + $0x8] sm:$0xff] }
 0x30c   : > { %v1268_v22 = vmul.f32 %v1265_v62, %v1261_v29  ;;  %v1269_v36 = vmul.f32 %v1265_v62, %v1262_v30  ;;  %v1270_v37 = vmul.f32 %v1265_v62, %v1263_v31 }
 0x30d   : > { %v1401_v38 = vpack.c.bf16 %v1280_v33, %v1280_v33  ;;  %v1272_v39 = vmax.f32 %v1266_v34, 0.0  ;;  %v1273_v40 = vmax.f32 %v1267_v35, 0.0  ;;  %v1277_v41 = vmax.f32 %v1271_v32, 0.0  ;;  %1533 = vmatpush.bf16.msrb.mxu0 %v2079_v28  ;;  %v2078_v32 = vld [vmem:[#allocation11] sm:$0xff] }
 0x30e   : > { %v1274_v63 = vmax.f32 %v1268_v22, 0.0  ;;  %v1275_v42 = vmax.f32 %v1269_v36, 0.0  ;;  %v1276_v23 = vmax.f32 %v1270_v37, 0.0 }
 0x30f   : > { %1410 = vmatmul.bf16.vlgmr.msrb.gmra.mxu3 %v1401_v38  ;;  %v1281_v24 = vpack.c.bf16 %v1273_v40, %v1272_v39 }
 0x310   : > { %v1282_v43 = vpack.c.bf16 %v1275_v42, %v1274_v63  ;;  %v1283_v25 = vpack.c.bf16 %v1277_v41, %v1276_v23 }
 0x311   : > { %1357 = vmatmul.bf16.vlgmr.msrb.gmra.mxu1 %v1281_v24  ;;  %1534 = vmatpush.bf16.msrb.mxu0 %v2078_v32 }
 0x321   : > { %1362 = vmatmul.bf16.gmra.mxu1 %v1282_v43 }
 0x331   : > { %1367 = vmatmul.bf16.gmra.mxu1 %v1283_v25 }
 0x38e   : > { %v2706_v27 = vpop.f32.mrf.mxu1 }
 0x38f   : > { %v1384_v52 = vmul.f32 %v2706_v27, %v2706_v27 }
 0x392   : > { %v1411_v44 = vpop.f32.mrf.mxu3 }
 0x393   : > { %v1417_v20 = vmul.f32 %v1411_v44, %v1411_v44  ;;  %v1415_v62 = vmul.f32 8.0, %v1411_v44 }
 0x395   : > { %v1418_v29 = vmul.f32 8.0, %v1417_v20 }
 0x396   : > { %v2708_v45 = vpop.f32.mrf.mxu1 }
 0x397   : > { %v1385_v50 = vmul.f32 %v2708_v45, %v2708_v45  ;;  %v1373_v53 = vadd.f32 %v2708_v45, %v2706_v27 }
 0x399   : > { %v1390_v56 = vadd.f32 %v1385_v50, %v1384_v52 }
 0x39a   : > { %v1413_v46 = vpop.f32.mrf.mxu3 }
 0x39e   : > { %v2710_v47 = vpop.f32.mrf.mxu1 }
 0x39f   : > { %v1386_v54 = vmul.f32 %v2710_v47, %v2710_v47  ;;  %v1374_v60 = vadd.f32 %v1373_v53, %v2710_v47 }
 0x3a1   : > { %v1391_v0 = vadd.f32 %v1390_v56, %v1386_v54 }
 0x3a6   : > { %v2712_v48 = vpop.f32.mrf.mxu1 }
 0x3a7   : > { %v1387_v61 = vmul.f32 %v2712_v48, %v2712_v48  ;;  %v1375_v1 = vadd.f32 %v1374_v60, %v2712_v48 }
 0x3a9   : > { %v1392_v4 = vadd.f32 %v1391_v0, %v1387_v61 }
 0x3ae   : > { %v2716_v51 = vpop.f32.mrf.mxu1 }
 0x3af   : > { %v1388_v2 = vmul.f32 %v2716_v51, %v2716_v51  ;;  %v1376_v5 = vadd.f32 %v1375_v1, %v2716_v51 }
 0x3b1   : > { %v1393_v7 = vadd.f32 %v1392_v4, %v1388_v2 }
 0x3b6   : > { %v1370_v6 = vpop.f32.mrf.mxu1 }
 0x3b7   : > { %v1377_v9 = vadd.f32 %v1376_v5, %v1370_v6  ;;  %v1389_v10 = vmul.f32 %v1370_v6, %v1370_v6 }
 0x3b9   : > { %v1378_v11 = vrot.slane %v1377_v9, 4  ;;  %v1394_v12 = vadd.f32 %v1393_v7, %v1389_v10 }
 0x3bb   : > { %v1379_v14 = vadd.f32 %v1378_v11, %v1377_v9  ;;  %v1395_v15 = vrot.slane %v1394_v12, 4 }
 0x3bd   : > { %v1380_v59 = vrot.slane %v1379_v14, 2  ;;  %v1396_v16 = vadd.f32 %v1395_v15, %v1394_v12 }
 0x3bf   : > { %v1381_v17 = vadd.f32 %v1380_v59, %v1379_v14  ;;  %v1397_v18 = vrot.slane %v1396_v16, 2 }
 0x3c1   : > { %v1382_v21 = vrot.slane %v1381_v17, 1  ;;  %v1398_v8 = vadd.f32 %v1397_v18, %v1396_v16 }
 0x3c3   : > { %v1383_v13 = vadd.f32 %v1382_v21, %v1381_v17  ;;  %v1399_v26 = vrot.slane %v1398_v8, 1 }
 0x3c5   : > { %v1400_v30 = vadd.f32 %v1399_v26, %v1398_v8  ;;  %v1416_v31 = vsub.f32 %v1383_v13, %v1415_v62 }
 0x3c7   : > { %v1419_v33 = vsub.f32 %v1400_v30, %v1418_v29  ;;  %v1420_v34 = vmul.f32 0.025, %v1416_v31 }
 0x3c9   : > { %v1421_v35 = vmul.f32 0.025, %v1419_v33  ;;  %v1422_v22 = vmul.f32 %v1420_v34, %v1420_v34  ;;  %v1436_v23 = vperm.slane %v1420_v34, 0 }
 0x3cb   : > { %v1423_v36 = vsub.f32 %v1421_v35, %v1422_v22  ;;  %v1442_v25 = vsub.f32 %v1370_v6, %v1436_v23  ;;  %v1437_v46 = vsub.f32 %v2706_v27, %v1436_v23  ;;  %v1438_v49 = vsub.f32 %v2708_v45, %v1436_v23 }
 0x3cc   : > { %v1439_v50 = vsub.f32 %v2710_v47, %v1436_v23  ;;  %v1440_v52 = vsub.f32 %v2712_v48, %v1436_v23  ;;  %v1441_v53 = vsub.f32 %v2716_v51, %v1436_v23  ;;  %v2211_v48 = vld [vmem:[%s2760_s4] ss:$0 sm:$0xff] }
 0x3cd   : > { %v1424_v37 = vmax.f32 %v1423_v36, 0.0 }
 0x3cf   : > { %v1425_v38 = vadd.f32 1e-05, %v1424_v37 }
 0x3d1   : > { %2218 = vrsqrt.f32 %v1425_v38  ;;  %vm1432_vm13 = vweird.f32 %v1425_v38 }
 0x3d7   : > { %v2219_v39 = vpop.eup %2218 }
 0x3d8   : > { %v1427_v40 = vmul.f32 %v2219_v39, %v1425_v38  ;;  %vm1433_vm12 = vweird.f32 %v2219_v39 }
 0x3d9   : > { %vm1434_vm14 = vmor %vm1432_vm13, %vm1433_vm12 }
 0x3da   : > { %v1428_v41 = vmul.f32 %v2219_v39, %v1427_v40 }
 0x3dc   : > { %v1429_v63 = vmul.f32 0.5, %v1428_v41 }
 0x3de   : > { %v1430_v42 = vsub.f32 1.5, %v1429_v63 }
 0x3e0   : > { %v1431_v24 = vmul.f32 %v2219_v39, %v1430_v42 }
 0x3e2   : > { %v1435_v43 = vsel %vm1434_vm14, %v2219_v39, %v1431_v24 }
 0x3e3   : > { %v1443_v44 = vperm.slane %v1435_v43, 0 }
 0x3e5   : > { %v1449_v54 = vmul.f32 %v1443_v44, %v1442_v25  ;;  %v1444_v55 = vmul.f32 %v1443_v44, %v1437_v46  ;;  %v1445_v56 = vmul.f32 %v1443_v44, %v1438_v49  ;;  %v1446_v60 = vmul.f32 %v1443_v44, %v1439_v50 }
 0x3e6   : > { %v1447_v61 = vmul.f32 %v1443_v44, %v1440_v52  ;;  %v1448_v0 = vmul.f32 %v1443_v44, %v1441_v53 }
 0x3e7   : > { %v1450_v1 = vmax.f32 %v1444_v55, 0.0  ;;  %v1451_v2 = vmax.f32 %v1445_v56, 0.0  ;;  %v1452_v3 = vmax.f32 %v1446_v60, 0.0  ;;  %v1455_v4 = vmax.f32 %v1449_v54, 0.0 }
 0x3e8   : > { %v1453_v5 = vmax.f32 %v1447_v61, 0.0  ;;  %v1454_v27 = vmax.f32 %v1448_v0, 0.0 }
 0x3e9   : > { %v1456_v6 = vpack.c.bf16 %v1451_v2, %v1450_v1 }
 0x3ea   : > { %v1457_v45 = vpack.c.bf16 %v1453_v5, %v1452_v3  ;;  %v1458_v7 = vpack.c.bf16 %v1455_v4, %v1454_v27 }
 0x3eb   : > { %1535 = vmatmul.bf16.vlgmr.msrb.gmra.mxu0 %v1456_v6 }
 0x3fb   : > { %1540 = vmatmul.bf16.gmra.mxu0 %v1457_v45 }
 0x40b   : > { %1545 = vmatmul.bf16.gmra.mxu0 %v1458_v7 }
 0x468   : > { %v1536_v47 = vpop.f32.mrf.mxu0 }
 0x469   : > { %v1537_v9 = vadd.f32 %v2211_v48, %v1536_v47 }
 0x470   : > { %v1538_v51 = vpop.f32.mrf.mxu0 }
 0x471   : > { %v1539_v10 = vadd.f32 %v2211_v48, %v1538_v51 }
 0x473   : > { %v2106_v58 = vpack.c.bf16 %v1539_v10, %v1537_v9 }
 0x475   : > { %2107 = vst [vmem:[#allocation13] sm:$0xff] %v2106_v58  }
 0x478   : > { %v1541_v11 = vpop.f32.mrf.mxu0 }
 0x479   : > { %v1542_v14 = vadd.f32 %v2211_v48, %v1541_v11 }
 0x480   : > { %v1543_v12 = vpop.f32.mrf.mxu0 }
 0x481   : > { %v1544_v15 = vadd.f32 %v2211_v48, %v1543_v12 }
 0x483   : > { %v2111_v57 = vpack.c.bf16 %v1544_v15, %v1542_v14 }
 0x485   : > { %2120 = vst [vmem:[#allocation13 + $0x8] sm:$0xff] %v2111_v57  }
 0x488   : > { %v1546_v59 = vpop.f32.mrf.mxu0 }
 0x489   : > { %v1547_v17 = vadd.f32 %v2211_v48, %v1546_v59 }
 0x490   : > { %v1548_v16 = vpop.f32.mrf.mxu0 }
 0x491   : > { %v1549_v18 = vadd.f32 %v2211_v48, %v1548_v16 }
 0x493   : > { %v2116_v19 = vpack.c.bf16 %v1549_v18, %v1547_v17 }
 0x495   : > { %2121 = vst [vmem:[#allocation13 + $0x10] sm:$0xff] %v2116_v19  }
 0x496 PF: > { %p2166_p8 = scmp.eq.s32.totalorder %s2486_s22, 2  ;;  %s2434_s6 = smov [#allocation13]  }
 0x497   : > { %s1568_s16 = sshll.u32 %s2434_s6, 4  ;;  %s1570_s24 = sshll.u32 %s2761_s5, 4  ;;  %s1569_s16 = int_to_ptr.vmem [resolvable:$true] %s1568_s16  ;;  %s1571_s24 = int_to_ptr.hbm [resolvable:$true] %s1570_s24 }
 0x498   : > { %s2435_s25 = smov 64   ;;  %s2436_s30 = smov 4  }
 0x499   : > { %2147 = dma.vmem_to_hbm [thread:$0]  (%p2166_p8), %s1569_s16, 384, %s1571_s24, [#allocation7], %s2435_s25, %s2435_s25, %s2436_s30  }
 0x49a   : > { %2406 = dma.done.wait (%p2166_p8), [#allocation7], 384  }
 0x49b   : > { %2408 = vsyncadd (%p2166_p8), [#allocation7], 4294966912 }
 0x49c PF: > { %p18_p10 = scmp.ge.s32.totalorder %s2489_s23, 5   ;;  %s2768_s18 = smov %s2415_s19 }
 0x49d   : > { %s2769_s19 = smov %s2419_s20  ;;  %s2770_s20 = smov %s2499_s26 }
 0x49e   : > { %s2771_s21 = smov %s2489_s23  ;;  %20 = sbr.rel (!%p18_p10) target bundleno = 6 (0x6), region = 100 }
 0x4a3   :  { %1587 = vsyncpa [#allocation6], 1 }
 0x4a4   :  { %1589 = vsyncpa [#allocation6 + $0x1], 1 }
 0x4a5   :  { %1590 = vsyncpa [#allocation9], 1 }
 0x4a6   :  { %1591 = vsyncpa [#allocation12], 1 }
 0x4a7   :  { %1592 = vsyncpa [#allocation7], 1 }
 0x4a8   :  { %1594 = vsyncpa [#allocation7 + $0x1], 1 }

</bundles_post_ra>
